<compile_context>
chip_gen: v7x
topology: tpu7x:2x2x1
jax: 0.10.0
libtpu: 0.0.40
codegen_flags: <defaults>
</compile_context>

<pallas_src>
import jax
import jax.numpy as jnp
import numpy as np
from jax.experimental import pallas as pl
from jax.experimental.pallas import tpu as pltpu

# Fixed dims from RNNModel.__init__
INPUT_SIZE = 32
HIDDEN_SIZE = 64
GATE_PAD = 128          # per-gate lane-padded width (one vreg of lanes)


def rnn_lstm_decoder_kernel(xemb_ref, wih_ref, whh_ref, bias_ref,
                            h0_ref, c0_ref, w1e_ref, w2t_ref,
                            out_ref, xp_ref, hs_ref):
    """xemb_ref: (S*B, I)    time-major flattened embeddings, row = s*B + b
       wih_ref : (I, 4*GP)   pre-transposed, per-gate lane-padded input weights
       whh_ref : (H, 4*GP)   pre-transposed, per-gate lane-padded recurrent weights
       bias_ref: (1, 4*GP)   b_ih + b_hh, per-gate lane-padded
       h0_ref, c0_ref: (B, H)
       w1e_ref : (T*B, S*B)  kron(first_decoder.weight, I_B)  (block-diag time mixer)
       w2t_ref : (H, V)      second_decoder.weight transposed
       out_ref : (T*B, V)    logits, row = t*B + b
       xp_ref  : (S*B, 4*GP) VMEM scratch - hoisted input projection
       hs_ref  : (S*B, H)    VMEM scratch - hidden-state trajectory
    """
    B, H = h0_ref.shape
    SB = xemb_ref.shape[0]
    S = SB // B
    GP = whh_ref.shape[1] // 4          # padded per-gate width (= GATE_PAD)

    # 1) Hoisted input projection + bias for every timestep: one matmul, done once,
    #    off the serial critical path.
    xp_ref[...] = (
        jnp.dot(xemb_ref[...], wih_ref[...], preferred_element_type=jnp.float32)
        + bias_ref[...])                                          # (S*B, 4*GP)

    # 2) LSTM recurrence, fully unrolled (S is small & static). Only the recurrent
    #    matmul + elementwise gate math sit on the serial chain. Gate slices start
    #    at multiples of 128 lanes -> no cross-lane shuffles. PyTorch gate order
    #    is [i, f, g, o].
    h = h0_ref[...]
    c = c0_ref[...]
    for t in range(S):
        r0 = t * B                                                # static offset
        gates = xp_ref[r0:r0 + B, :] + jnp.dot(
            h, whh_ref[...], preferred_element_type=jnp.float32)  # (B, 4*GP)
        i_g = jax.nn.sigmoid(gates[:, 0 * GP:0 * GP + H])
        f_g = jax.nn.sigmoid(gates[:, 1 * GP:1 * GP + H])
        g_g = jnp.tanh(gates[:, 2 * GP:2 * GP + H])
        o_g = jax.nn.sigmoid(gates[:, 3 * GP:3 * GP + H])
        c = f_g * c + i_g * g_g
        h = o_g * jnp.tanh(c)
        hs_ref[r0:r0 + B, :] = h

    # 3) Fused whole-batch decoder (DecoderModel forward): two lane-dense matmuls,
    #    one (T*B, V) store. The Linear biases are unused in the PyTorch forward.
    out1 = jnp.dot(w1e_ref[...], hs_ref[...],
                   preferred_element_type=jnp.float32)            # (T*B, H)
    out_ref[...] = jnp.dot(out1, w2t_ref[...],
                           preferred_element_type=jnp.float32)    # (T*B, V)


def rnn_model_forward(input_ids, params):
    """Pallas implementation of RNNModel.forward (labels=None path -> logits)."""
    emb_w, wih, whh, bias, w1, w2, h0, c0 = params
    B, S = input_ids.shape
    T = w1.shape[0]
    V = w2.shape[0]
    H = HIDDEN_SIZE
    GP = GATE_PAD

    # --- glue / XLA-side layout plumbing (cheap relative to the kernel) ---
    embed = jnp.take(emb_w, input_ids, axis=0)                    # (B, S, I)
    xemb = jnp.transpose(embed, (1, 0, 2)).reshape(S * B, INPUT_SIZE)  # row = s*B + b

    def pad_gate_cols(w_t):
        # (K, 4H) -> (K, 4*GP); gate k valid in columns [k*GP, k*GP + H), zeros elsewhere.
        K = w_t.shape[0]
        return jnp.pad(w_t.reshape(K, 4, H),
                       ((0, 0), (0, 0), (0, GP - H))).reshape(K, 4 * GP)

    wih_p = pad_gate_cols(wih.T)                                  # (I, 4*GP)
    whh_p = pad_gate_cols(whh.T)                                  # (H, 4*GP)
    bias_p = pad_gate_cols(bias)                                  # (1, 4*GP)
    w2_t = w2.T                                                   # (H, V)
    # Block-diagonal expansion of the time-mixing decoder weight: fuses the batch dim
    # so the 'bih,ti->bth' einsum becomes a single 2D matmul inside the kernel.
    w1e = jnp.kron(w1, jnp.eye(B, dtype=w1.dtype))                # (T*B, S*B)

    vmem = pl.BlockSpec(memory_space=pltpu.MemorySpace.VMEM)
    out_tb = pl.pallas_call(
        rnn_lstm_decoder_kernel,
        out_shape=jax.ShapeDtypeStruct((T * B, V), jnp.float32),
        in_specs=[vmem] * 8,
        out_specs=vmem,
        scratch_shapes=[
            pltpu.VMEM((S * B, 4 * GP), jnp.float32),   # hoisted input projection
            pltpu.VMEM((S * B, H), jnp.float32),        # hidden-state trajectory
        ],
    )(xemb, wih_p, whh_p, bias_p, h0, c0, w1e, w2_t)

    logits = out_tb.reshape(T, B, V).transpose(1, 0, 2)           # (B, T, V)
    # TODO(synk): CrossEntropyLoss branch (labels is not None) not implemented here.
    return logits


def reference_forward(input_ids, params):
    """Pure-JAX reference matching the PyTorch semantics, for verification."""
    emb_w, wih, whh, bias, w1, w2, h0, c0 = params
    B, S = input_ids.shape
    H = HIDDEN_SIZE
    embed = emb_w[input_ids]                         # (B, S, I)
    h, c = h0, c0
    hs = []
    for t in range(S):
        x = embed[:, t, :]
        gates = x @ wih.T + h @ whh.T + bias         # (B, 4H)
        i_g = jax.nn.sigmoid(gates[:, 0 * H:1 * H])
        f_g = jax.nn.sigmoid(gates[:, 1 * H:2 * H])
        g_g = jnp.tanh(gates[:, 2 * H:3 * H])
        o_g = jax.nn.sigmoid(gates[:, 3 * H:4 * H])
        c = f_g * c + i_g * g_g
        h = o_g * jnp.tanh(c)
        hs.append(h)
    lstm_out = jnp.stack(hs, axis=1)                 # (B, S, H)
    out1 = jnp.einsum('bih,ti->bth', lstm_out, w1)
    out2 = jnp.einsum('bth,vh->btv', out1, w2)
    return out2


def make_params(key, *, batch, input_seq_len, target_seq_len, vocab_size):
    ks = jax.random.split(key, 10)

    def xavier_normal(k, shape):
        fan_out, fan_in = shape
        std = (2.0 / (fan_in + fan_out)) ** 0.5
        return (std * jax.random.normal(k, shape)).astype(jnp.float32)

    emb_w = xavier_normal(ks[0], (vocab_size, INPUT_SIZE))

    # PyTorch LSTM default init: U(-1/sqrt(H), 1/sqrt(H))
    bound = 1.0 / (HIDDEN_SIZE ** 0.5)
    wih = jax.random.uniform(ks[1], (4 * HIDDEN_SIZE, INPUT_SIZE),
                             minval=-bound, maxval=bound, dtype=jnp.float32)
    whh = jax.random.uniform(ks[2], (4 * HIDDEN_SIZE, HIDDEN_SIZE),
                             minval=-bound, maxval=bound, dtype=jnp.float32)
    b_ih = jax.random.uniform(ks[3], (4 * HIDDEN_SIZE,),
                              minval=-bound, maxval=bound, dtype=jnp.float32)
    b_hh = jax.random.uniform(ks[4], (4 * HIDDEN_SIZE,),
                              minval=-bound, maxval=bound, dtype=jnp.float32)
    bias = (b_ih + b_hh).reshape(1, 4 * HIDDEN_SIZE)

    w1 = xavier_normal(ks[5], (target_seq_len, input_seq_len))   # first_decoder.weight
    w2 = xavier_normal(ks[6], (vocab_size, HIDDEN_SIZE))         # second_decoder.weight

    # init_hidden_states: xavier_normal_ on (1, B, H) -> fan_in=B*H, fan_out=H
    std_h = (2.0 / (batch * HIDDEN_SIZE + HIDDEN_SIZE)) ** 0.5
    h0 = (std_h * jax.random.normal(ks[7], (batch, HIDDEN_SIZE))).astype(jnp.float32)
    c0 = (std_h * jax.random.normal(ks[8], (batch, HIDDEN_SIZE))).astype(jnp.float32)

    input_ids = jax.random.randint(ks[9], (batch, input_seq_len), 0, vocab_size,
                                   dtype=jnp.int32)
    return (emb_w, wih, whh, bias, w1, w2, h0, c0), input_ids


if __name__ == "__main__":
    BATCH = 2
    INPUT_SEQ_LEN = 8
    TARGET_SEQ_LEN = 8
    VOCAB_SIZE = 128

    params, input_ids = make_params(jax.random.PRNGKey(0),
                                    batch=BATCH,
                                    input_seq_len=INPUT_SEQ_LEN,
                                    target_seq_len=TARGET_SEQ_LEN,
                                    vocab_size=VOCAB_SIZE)

    forward = jax.jit(rnn_model_forward)
    logits = jax.block_until_ready(forward(input_ids, params))
    assert logits.shape == (BATCH, TARGET_SEQ_LEN, VOCAB_SIZE)

    ref = jax.block_until_ready(reference_forward(input_ids, params))
    np.testing.assert_allclose(np.asarray(logits), np.asarray(ref),
                               rtol=1e-4, atol=1e-4)
    print("KERNEL_OK")
</pallas_src>

<mosaic_0001>
module attributes {stable_mosaic.version = 11 : i64} {
  func.func @rnn_lstm_decoder_kernel(%arg0: memref<16x32xf32, #tpu.memory_space<vmem>>, %arg1: memref<32x512xf32, #tpu.memory_space<vmem>>, %arg2: memref<64x512xf32, #tpu.memory_space<vmem>>, %arg3: memref<1x512xf32, #tpu.memory_space<vmem>>, %arg4: memref<2x64xf32, #tpu.memory_space<vmem>>, %arg5: memref<2x64xf32, #tpu.memory_space<vmem>>, %arg6: memref<16x16xf32, #tpu.memory_space<vmem>>, %arg7: memref<64x128xf32, #tpu.memory_space<vmem>>, %arg8: memref<16x128xf32, #tpu.memory_space<vmem>>, %arg9: memref<16x512xf32, #tpu.memory_space<vmem>>, %arg10: memref<16x64xf32, #tpu.memory_space<vmem>>) attributes {dimension_semantics = [], scalar_prefetch = 0 : i64, scratch_operands = 2 : i64, tpu.core_type = #tpu.core_type<tc>} {
    %c0 = arith.constant 0 : index
    %c0_0 = arith.constant 0 : index
    %0 = vector.load %arg0[%c0, %c0_0] : memref<16x32xf32, #tpu.memory_space<vmem>>, vector<16x32xf32>
    %c0_1 = arith.constant 0 : index
    %c0_2 = arith.constant 0 : index
    %1 = vector.load %arg1[%c0_1, %c0_2] : memref<32x512xf32, #tpu.memory_space<vmem>>, vector<32x512xf32>
    %cst = arith.constant dense<0.000000e+00> : vector<16x512xf32>
    %2 = tpu.matmul %0, %1, %cst {dimension_numbers = #tpu.dot_dimension_numbers<[1], [0], [0], [1], [0, 0, 1, 1], [], []>} : vector<16x32xf32>, vector<32x512xf32>, vector<16x512xf32> -> vector<16x512xf32>
    %c0_3 = arith.constant 0 : index
    %c0_4 = arith.constant 0 : index
    %3 = vector.load %arg3[%c0_3, %c0_4] : memref<1x512xf32, #tpu.memory_space<vmem>>, vector<1x512xf32>
    %4 = vector.broadcast %3 : vector<1x512xf32> to vector<16x512xf32>
    %5 = arith.addf %2, %4 : vector<16x512xf32>
    %c0_5 = arith.constant 0 : index
    %c0_6 = arith.constant 0 : index
    %6 = vector.load %arg9[%c0_5, %c0_6] : memref<16x512xf32, #tpu.memory_space<vmem>>, vector<16x512xf32>
    tpu.vector_store %arg9[%c0_5, %c0_6], %5 {strides = array<i32>} : memref<16x512xf32, #tpu.memory_space<vmem>>, vector<16x512xf32>,
    %c0_7 = arith.constant 0 : index
    %c0_8 = arith.constant 0 : index
    %7 = vector.load %arg4[%c0_7, %c0_8] : memref<2x64xf32, #tpu.memory_space<vmem>>, vector<2x64xf32>
    %c0_9 = arith.constant 0 : index
    %c0_10 = arith.constant 0 : index
    %8 = vector.load %arg5[%c0_9, %c0_10] : memref<2x64xf32, #tpu.memory_space<vmem>>, vector<2x64xf32>
    %c0_11 = arith.constant 0 : index
    %c0_12 = arith.constant 0 : index
    %9 = vector.load %arg9[%c0_11, %c0_12] : memref<16x512xf32, #tpu.memory_space<vmem>>, vector<2x512xf32>
    %c0_13 = arith.constant 0 : index
    %c0_14 = arith.constant 0 : index
    %10 = vector.load %arg2[%c0_13, %c0_14] : memref<64x512xf32, #tpu.memory_space<vmem>>, vector<64x512xf32>
    %cst_15 = arith.constant dense<0.000000e+00> : vector<2x512xf32>
    %11 = tpu.matmul %7, %10, %cst_15 {dimension_numbers = #tpu.dot_dimension_numbers<[1], [0], [0], [1], [0, 0, 1, 1], [], []>} : vector<2x64xf32>, vector<64x512xf32>, vector<2x512xf32> -> vector<2x512xf32>
    %12 = arith.addf %9, %11 : vector<2x512xf32>
    %13 = vector.extract_strided_slice %12 {offsets = [0, 0], sizes = [2, 64], strides = [1, 1]} : vector<2x512xf32> to vector<2x64xf32>
    %14 = arith.negf %13 : vector<2x64xf32>
    %15 = math.exp %14 : vector<2x64xf32>
    %cst_16 = arith.constant 1.000000e+00 : f32
    %16 = vector.broadcast %cst_16 : f32 to vector<2x64xf32>
    %17 = arith.addf %16, %15 : vector<2x64xf32>
    %18 = arith.divf %16, %17 : vector<2x64xf32>
    %19 = vector.extract_strided_slice %12 {offsets = [0, 128], sizes = [2, 64], strides = [1, 1]} : vector<2x512xf32> to vector<2x64xf32>
    %20 = arith.negf %19 : vector<2x64xf32>
    %21 = math.exp %20 : vector<2x64xf32>
    %cst_17 = arith.constant 1.000000e+00 : f32
    %22 = vector.broadcast %cst_17 : f32 to vector<2x64xf32>
    %23 = arith.addf %22, %21 : vector<2x64xf32>
    %24 = arith.divf %22, %23 : vector<2x64xf32>
    %25 = vector.extract_strided_slice %12 {offsets = [0, 256], sizes = [2, 64], strides = [1, 1]} : vector<2x512xf32> to vector<2x64xf32>
    %26 = math.tanh %25 : vector<2x64xf32>
    %27 = vector.extract_strided_slice %12 {offsets = [0, 384], sizes = [2, 64], strides = [1, 1]} : vector<2x512xf32> to vector<2x64xf32>
    %28 = arith.negf %27 : vector<2x64xf32>
    %29 = math.exp %28 : vector<2x64xf32>
    %cst_18 = arith.constant 1.000000e+00 : f32
    %30 = vector.broadcast %cst_18 : f32 to vector<2x64xf32>
    %31 = arith.addf %30, %29 : vector<2x64xf32>
    %32 = arith.divf %30, %31 : vector<2x64xf32>
    %33 = arith.mulf %24, %8 : vector<2x64xf32>
    %34 = arith.mulf %18, %26 : vector<2x64xf32>
    %35 = arith.addf %33, %34 : vector<2x64xf32>
    %36 = math.tanh %35 : vector<2x64xf32>
    %37 = arith.mulf %32, %36 : vector<2x64xf32>
    %c0_19 = arith.constant 0 : index
    %c0_20 = arith.constant 0 : index
    %38 = vector.load %arg10[%c0_19, %c0_20] : memref<16x64xf32, #tpu.memory_space<vmem>>, vector<2x64xf32>
    tpu.vector_store %arg10[%c0_19, %c0_20], %37 {strides = array<i32>} : memref<16x64xf32, #tpu.memory_space<vmem>>, vector<2x64xf32>,
    %c2 = arith.constant 2 : index
    %c0_21 = arith.constant 0 : index
    %39 = vector.load %arg9[%c2, %c0_21] : memref<16x512xf32, #tpu.memory_space<vmem>>, vector<2x512xf32>
    %c0_22 = arith.constant 0 : index
    %c0_23 = arith.constant 0 : index
    %40 = vector.load %arg2[%c0_22, %c0_23] : memref<64x512xf32, #tpu.memory_space<vmem>>, vector<64x512xf32>
    %cst_24 = arith.constant dense<0.000000e+00> : vector<2x512xf32>
    %41 = tpu.matmul %37, %40, %cst_24 {dimension_numbers = #tpu.dot_dimension_numbers<[1], [0], [0], [1], [0, 0, 1, 1], [], []>} : vector<2x64xf32>, vector<64x512xf32>, vector<2x512xf32> -> vector<2x512xf32>
    %42 = arith.addf %39, %41 : vector<2x512xf32>
    %43 = vector.extract_strided_slice %42 {offsets = [0, 0], sizes = [2, 64], strides = [1, 1]} : vector<2x512xf32> to vector<2x64xf32>
    %44 = arith.negf %43 : vector<2x64xf32>
    %45 = math.exp %44 : vector<2x64xf32>
    %cst_25 = arith.constant 1.000000e+00 : f32
    %46 = vector.broadcast %cst_25 : f32 to vector<2x64xf32>
    %47 = arith.addf %46, %45 : vector<2x64xf32>
    %48 = arith.divf %46, %47 : vector<2x64xf32>
    %49 = vector.extract_strided_slice %42 {offsets = [0, 128], sizes = [2, 64], strides = [1, 1]} : vector<2x512xf32> to vector<2x64xf32>
    %50 = arith.negf %49 : vector<2x64xf32>
    %51 = math.exp %50 : vector<2x64xf32>
    %cst_26 = arith.constant 1.000000e+00 : f32
    %52 = vector.broadcast %cst_26 : f32 to vector<2x64xf32>
    %53 = arith.addf %52, %51 : vector<2x64xf32>
    %54 = arith.divf %52, %53 : vector<2x64xf32>
    %55 = vector.extract_strided_slice %42 {offsets = [0, 256], sizes = [2, 64], strides = [1, 1]} : vector<2x512xf32> to vector<2x64xf32>
    %56 = math.tanh %55 : vector<2x64xf32>
    %57 = vector.extract_strided_slice %42 {offsets = [0, 384], sizes = [2, 64], strides = [1, 1]} : vector<2x512xf32> to vector<2x64xf32>
    %58 = arith.negf %57 : vector<2x64xf32>
    %59 = math.exp %58 : vector<2x64xf32>
    %cst_27 = arith.constant 1.000000e+00 : f32
    %60 = vector.broadcast %cst_27 : f32 to vector<2x64xf32>
    %61 = arith.addf %60, %59 : vector<2x64xf32>
    %62 = arith.divf %60, %61 : vector<2x64xf32>
    %63 = arith.mulf %54, %35 : vector<2x64xf32>
    %64 = arith.mulf %48, %56 : vector<2x64xf32>
    %65 = arith.addf %63, %64 : vector<2x64xf32>
    %66 = math.tanh %65 : vector<2x64xf32>
    %67 = arith.mulf %62, %66 : vector<2x64xf32>
    %c2_28 = arith.constant 2 : index
    %c0_29 = arith.constant 0 : index
    %68 = vector.load %arg10[%c2_28, %c0_29] : memref<16x64xf32, #tpu.memory_space<vmem>>, vector<2x64xf32>
    tpu.vector_store %arg10[%c2_28, %c0_29], %67 {strides = array<i32>} : memref<16x64xf32, #tpu.memory_space<vmem>>, vector<2x64xf32>,
    %c4 = arith.constant 4 : index
    %c0_30 = arith.constant 0 : index
    %69 = vector.load %arg9[%c4, %c0_30] : memref<16x512xf32, #tpu.memory_space<vmem>>, vector<2x512xf32>
    %c0_31 = arith.constant 0 : index
    %c0_32 = arith.constant 0 : index
    %70 = vector.load %arg2[%c0_31, %c0_32] : memref<64x512xf32, #tpu.memory_space<vmem>>, vector<64x512xf32>
    %cst_33 = arith.constant dense<0.000000e+00> : vector<2x512xf32>
    %71 = tpu.matmul %67, %70, %cst_33 {dimension_numbers = #tpu.dot_dimension_numbers<[1], [0], [0], [1], [0, 0, 1, 1], [], []>} : vector<2x64xf32>, vector<64x512xf32>, vector<2x512xf32> -> vector<2x512xf32>
    %72 = arith.addf %69, %71 : vector<2x512xf32>
    %73 = vector.extract_strided_slice %72 {offsets = [0, 0], sizes = [2, 64], strides = [1, 1]} : vector<2x512xf32> to vector<2x64xf32>
    %74 = arith.negf %73 : vector<2x64xf32>
    %75 = math.exp %74 : vector<2x64xf32>
    %cst_34 = arith.constant 1.000000e+00 : f32
    %76 = vector.broadcast %cst_34 : f32 to vector<2x64xf32>
    %77 = arith.addf %76, %75 : vector<2x64xf32>
    %78 = arith.divf %76, %77 : vector<2x64xf32>
    %79 = vector.extract_strided_slice %72 {offsets = [0, 128], sizes = [2, 64], strides = [1, 1]} : vector<2x512xf32> to vector<2x64xf32>
    %80 = arith.negf %79 : vector<2x64xf32>
    %81 = math.exp %80 : vector<2x64xf32>
    %cst_35 = arith.constant 1.000000e+00 : f32
    %82 = vector.broadcast %cst_35 : f32 to vector<2x64xf32>
    %83 = arith.addf %82, %81 : vector<2x64xf32>
    %84 = arith.divf %82, %83 : vector<2x64xf32>
    %85 = vector.extract_strided_slice %72 {offsets = [0, 256], sizes = [2, 64], strides = [1, 1]} : vector<2x512xf32> to vector<2x64xf32>
    %86 = math.tanh %85 : vector<2x64xf32>
    %87 = vector.extract_strided_slice %72 {offsets = [0, 384], sizes = [2, 64], strides = [1, 1]} : vector<2x512xf32> to vector<2x64xf32>
    %88 = arith.negf %87 : vector<2x64xf32>
    %89 = math.exp %88 : vector<2x64xf32>
    %cst_36 = arith.constant 1.000000e+00 : f32
    %90 = vector.broadcast %cst_36 : f32 to vector<2x64xf32>
    %91 = arith.addf %90, %89 : vector<2x64xf32>
    %92 = arith.divf %90, %91 : vector<2x64xf32>
    %93 = arith.mulf %84, %65 : vector<2x64xf32>
    %94 = arith.mulf %78, %86 : vector<2x64xf32>
    %95 = arith.addf %93, %94 : vector<2x64xf32>
    %96 = math.tanh %95 : vector<2x64xf32>
    %97 = arith.mulf %92, %96 : vector<2x64xf32>
    %c4_37 = arith.constant 4 : index
    %c0_38 = arith.constant 0 : index
    %98 = vector.load %arg10[%c4_37, %c0_38] : memref<16x64xf32, #tpu.memory_space<vmem>>, vector<2x64xf32>
    tpu.vector_store %arg10[%c4_37, %c0_38], %97 {strides = array<i32>} : memref<16x64xf32, #tpu.memory_space<vmem>>, vector<2x64xf32>,
    %c6 = arith.constant 6 : index
    %c0_39 = arith.constant 0 : index
    %99 = vector.load %arg9[%c6, %c0_39] : memref<16x512xf32, #tpu.memory_space<vmem>>, vector<2x512xf32>
    %c0_40 = arith.constant 0 : index
    %c0_41 = arith.constant 0 : index
    %100 = vector.load %arg2[%c0_40, %c0_41] : memref<64x512xf32, #tpu.memory_space<vmem>>, vector<64x512xf32>
    %cst_42 = arith.constant dense<0.000000e+00> : vector<2x512xf32>
    %101 = tpu.matmul %97, %100, %cst_42 {dimension_numbers = #tpu.dot_dimension_numbers<[1], [0], [0], [1], [0, 0, 1, 1], [], []>} : vector<2x64xf32>, vector<64x512xf32>, vector<2x512xf32> -> vector<2x512xf32>
    %102 = arith.addf %99, %101 : vector<2x512xf32>
    %103 = vector.extract_strided_slice %102 {offsets = [0, 0], sizes = [2, 64], strides = [1, 1]} : vector<2x512xf32> to vector<2x64xf32>
    %104 = arith.negf %103 : vector<2x64xf32>
    %105 = math.exp %104 : vector<2x64xf32>
    %cst_43 = arith.constant 1.000000e+00 : f32
    %106 = vector.broadcast %cst_43 : f32 to vector<2x64xf32>
    %107 = arith.addf %106, %105 : vector<2x64xf32>
    %108 = arith.divf %106, %107 : vector<2x64xf32>
    %109 = vector.extract_strided_slice %102 {offsets = [0, 128], sizes = [2, 64], strides = [1, 1]} : vector<2x512xf32> to vector<2x64xf32>
    %110 = arith.negf %109 : vector<2x64xf32>
    %111 = math.exp %110 : vector<2x64xf32>
    %cst_44 = arith.constant 1.000000e+00 : f32
    %112 = vector.broadcast %cst_44 : f32 to vector<2x64xf32>
    %113 = arith.addf %112, %111 : vector<2x64xf32>
    %114 = arith.divf %112, %113 : vector<2x64xf32>
    %115 = vector.extract_strided_slice %102 {offsets = [0, 256], sizes = [2, 64], strides = [1, 1]} : vector<2x512xf32> to vector<2x64xf32>
    %116 = math.tanh %115 : vector<2x64xf32>
    %117 = vector.extract_strided_slice %102 {offsets = [0, 384], sizes = [2, 64], strides = [1, 1]} : vector<2x512xf32> to vector<2x64xf32>
    %118 = arith.negf %117 : vector<2x64xf32>
    %119 = math.exp %118 : vector<2x64xf32>
    %cst_45 = arith.constant 1.000000e+00 : f32
    %120 = vector.broadcast %cst_45 : f32 to vector<2x64xf32>
    %121 = arith.addf %120, %119 : vector<2x64xf32>
    %122 = arith.divf %120, %121 : vector<2x64xf32>
    %123 = arith.mulf %114, %95 : vector<2x64xf32>
    %124 = arith.mulf %108, %116 : vector<2x64xf32>
    %125 = arith.addf %123, %124 : vector<2x64xf32>
    %126 = math.tanh %125 : vector<2x64xf32>
    %127 = arith.mulf %122, %126 : vector<2x64xf32>
    %c6_46 = arith.constant 6 : index
    %c0_47 = arith.constant 0 : index
    %128 = vector.load %arg10[%c6_46, %c0_47] : memref<16x64xf32, #tpu.memory_space<vmem>>, vector<2x64xf32>
    tpu.vector_store %arg10[%c6_46, %c0_47], %127 {strides = array<i32>} : memref<16x64xf32, #tpu.memory_space<vmem>>, vector<2x64xf32>,
    %c8 = arith.constant 8 : index
    %c0_48 = arith.constant 0 : index
    %129 = vector.load %arg9[%c8, %c0_48] : memref<16x512xf32, #tpu.memory_space<vmem>>, vector<2x512xf32>
    %c0_49 = arith.constant 0 : index
    %c0_50 = arith.constant 0 : index
    %130 = vector.load %arg2[%c0_49, %c0_50] : memref<64x512xf32, #tpu.memory_space<vmem>>, vector<64x512xf32>
    %cst_51 = arith.constant dense<0.000000e+00> : vector<2x512xf32>
    %131 = tpu.matmul %127, %130, %cst_51 {dimension_numbers = #tpu.dot_dimension_numbers<[1], [0], [0], [1], [0, 0, 1, 1], [], []>} : vector<2x64xf32>, vector<64x512xf32>, vector<2x512xf32> -> vector<2x512xf32>
    %132 = arith.addf %129, %131 : vector<2x512xf32>
    %133 = vector.extract_strided_slice %132 {offsets = [0, 0], sizes = [2, 64], strides = [1, 1]} : vector<2x512xf32> to vector<2x64xf32>
    %134 = arith.negf %133 : vector<2x64xf32>
    %135 = math.exp %134 : vector<2x64xf32>
    %cst_52 = arith.constant 1.000000e+00 : f32
    %136 = vector.broadcast %cst_52 : f32 to vector<2x64xf32>
    %137 = arith.addf %136, %135 : vector<2x64xf32>
    %138 = arith.divf %136, %137 : vector<2x64xf32>
    %139 = vector.extract_strided_slice %132 {offsets = [0, 128], sizes = [2, 64], strides = [1, 1]} : vector<2x512xf32> to vector<2x64xf32>
    %140 = arith.negf %139 : vector<2x64xf32>
    %141 = math.exp %140 : vector<2x64xf32>
    %cst_53 = arith.constant 1.000000e+00 : f32
    %142 = vector.broadcast %cst_53 : f32 to vector<2x64xf32>
    %143 = arith.addf %142, %141 : vector<2x64xf32>
    %144 = arith.divf %142, %143 : vector<2x64xf32>
    %145 = vector.extract_strided_slice %132 {offsets = [0, 256], sizes = [2, 64], strides = [1, 1]} : vector<2x512xf32> to vector<2x64xf32>
    %146 = math.tanh %145 : vector<2x64xf32>
    %147 = vector.extract_strided_slice %132 {offsets = [0, 384], sizes = [2, 64], strides = [1, 1]} : vector<2x512xf32> to vector<2x64xf32>
    %148 = arith.negf %147 : vector<2x64xf32>
    %149 = math.exp %148 : vector<2x64xf32>
    %cst_54 = arith.constant 1.000000e+00 : f32
    %150 = vector.broadcast %cst_54 : f32 to vector<2x64xf32>
    %151 = arith.addf %150, %149 : vector<2x64xf32>
    %152 = arith.divf %150, %151 : vector<2x64xf32>
    %153 = arith.mulf %144, %125 : vector<2x64xf32>
    %154 = arith.mulf %138, %146 : vector<2x64xf32>
    %155 = arith.addf %153, %154 : vector<2x64xf32>
    %156 = math.tanh %155 : vector<2x64xf32>
    %157 = arith.mulf %152, %156 : vector<2x64xf32>
    %c8_55 = arith.constant 8 : index
    %c0_56 = arith.constant 0 : index
    %158 = vector.load %arg10[%c8_55, %c0_56] : memref<16x64xf32, #tpu.memory_space<vmem>>, vector<2x64xf32>
    tpu.vector_store %arg10[%c8_55, %c0_56], %157 {strides = array<i32>} : memref<16x64xf32, #tpu.memory_space<vmem>>, vector<2x64xf32>,
    %c10 = arith.constant 10 : index
    %c0_57 = arith.constant 0 : index
    %159 = vector.load %arg9[%c10, %c0_57] : memref<16x512xf32, #tpu.memory_space<vmem>>, vector<2x512xf32>
    %c0_58 = arith.constant 0 : index
    %c0_59 = arith.constant 0 : index
    %160 = vector.load %arg2[%c0_58, %c0_59] : memref<64x512xf32, #tpu.memory_space<vmem>>, vector<64x512xf32>
    %cst_60 = arith.constant dense<0.000000e+00> : vector<2x512xf32>
    %161 = tpu.matmul %157, %160, %cst_60 {dimension_numbers = #tpu.dot_dimension_numbers<[1], [0], [0], [1], [0, 0, 1, 1], [], []>} : vector<2x64xf32>, vector<64x512xf32>, vector<2x512xf32> -> vector<2x512xf32>
    %162 = arith.addf %159, %161 : vector<2x512xf32>
    %163 = vector.extract_strided_slice %162 {offsets = [0, 0], sizes = [2, 64], strides = [1, 1]} : vector<2x512xf32> to vector<2x64xf32>
    %164 = arith.negf %163 : vector<2x64xf32>
    %165 = math.exp %164 : vector<2x64xf32>
    %cst_61 = arith.constant 1.000000e+00 : f32
    %166 = vector.broadcast %cst_61 : f32 to vector<2x64xf32>
    %167 = arith.addf %166, %165 : vector<2x64xf32>
    %168 = arith.divf %166, %167 : vector<2x64xf32>
    %169 = vector.extract_strided_slice %162 {offsets = [0, 128], sizes = [2, 64], strides = [1, 1]} : vector<2x512xf32> to vector<2x64xf32>
    %170 = arith.negf %169 : vector<2x64xf32>
    %171 = math.exp %170 : vector<2x64xf32>
    %cst_62 = arith.constant 1.000000e+00 : f32
    %172 = vector.broadcast %cst_62 : f32 to vector<2x64xf32>
    %173 = arith.addf %172, %171 : vector<2x64xf32>
    %174 = arith.divf %172, %173 : vector<2x64xf32>
    %175 = vector.extract_strided_slice %162 {offsets = [0, 256], sizes = [2, 64], strides = [1, 1]} : vector<2x512xf32> to vector<2x64xf32>
    %176 = math.tanh %175 : vector<2x64xf32>
    %177 = vector.extract_strided_slice %162 {offsets = [0, 384], sizes = [2, 64], strides = [1, 1]} : vector<2x512xf32> to vector<2x64xf32>
    %178 = arith.negf %177 : vector<2x64xf32>
    %179 = math.exp %178 : vector<2x64xf32>
    %cst_63 = arith.constant 1.000000e+00 : f32
    %180 = vector.broadcast %cst_63 : f32 to vector<2x64xf32>
    %181 = arith.addf %180, %179 : vector<2x64xf32>
    %182 = arith.divf %180, %181 : vector<2x64xf32>
    %183 = arith.mulf %174, %155 : vector<2x64xf32>
    %184 = arith.mulf %168, %176 : vector<2x64xf32>
    %185 = arith.addf %183, %184 : vector<2x64xf32>
    %186 = math.tanh %185 : vector<2x64xf32>
    %187 = arith.mulf %182, %186 : vector<2x64xf32>
    %c10_64 = arith.constant 10 : index
    %c0_65 = arith.constant 0 : index
    %188 = vector.load %arg10[%c10_64, %c0_65] : memref<16x64xf32, #tpu.memory_space<vmem>>, vector<2x64xf32>
    tpu.vector_store %arg10[%c10_64, %c0_65], %187 {strides = array<i32>} : memref<16x64xf32, #tpu.memory_space<vmem>>, vector<2x64xf32>,
    %c12 = arith.constant 12 : index
    %c0_66 = arith.constant 0 : index
    %189 = vector.load %arg9[%c12, %c0_66] : memref<16x512xf32, #tpu.memory_space<vmem>>, vector<2x512xf32>
    %c0_67 = arith.constant 0 : index
    %c0_68 = arith.constant 0 : index
    %190 = vector.load %arg2[%c0_67, %c0_68] : memref<64x512xf32, #tpu.memory_space<vmem>>, vector<64x512xf32>
    %cst_69 = arith.constant dense<0.000000e+00> : vector<2x512xf32>
    %191 = tpu.matmul %187, %190, %cst_69 {dimension_numbers = #tpu.dot_dimension_numbers<[1], [0], [0], [1], [0, 0, 1, 1], [], []>} : vector<2x64xf32>, vector<64x512xf32>, vector<2x512xf32> -> vector<2x512xf32>
    %192 = arith.addf %189, %191 : vector<2x512xf32>
    %193 = vector.extract_strided_slice %192 {offsets = [0, 0], sizes = [2, 64], strides = [1, 1]} : vector<2x512xf32> to vector<2x64xf32>
    %194 = arith.negf %193 : vector<2x64xf32>
    %195 = math.exp %194 : vector<2x64xf32>
    %cst_70 = arith.constant 1.000000e+00 : f32
    %196 = vector.broadcast %cst_70 : f32 to vector<2x64xf32>
    %197 = arith.addf %196, %195 : vector<2x64xf32>
    %198 = arith.divf %196, %197 : vector<2x64xf32>
    %199 = vector.extract_strided_slice %192 {offsets = [0, 128], sizes = [2, 64], strides = [1, 1]} : vector<2x512xf32> to vector<2x64xf32>
    %200 = arith.negf %199 : vector<2x64xf32>
    %201 = math.exp %200 : vector<2x64xf32>
    %cst_71 = arith.constant 1.000000e+00 : f32
    %202 = vector.broadcast %cst_71 : f32 to vector<2x64xf32>
    %203 = arith.addf %202, %201 : vector<2x64xf32>
    %204 = arith.divf %202, %203 : vector<2x64xf32>
    %205 = vector.extract_strided_slice %192 {offsets = [0, 256], sizes = [2, 64], strides = [1, 1]} : vector<2x512xf32> to vector<2x64xf32>
    %206 = math.tanh %205 : vector<2x64xf32>
    %207 = vector.extract_strided_slice %192 {offsets = [0, 384], sizes = [2, 64], strides = [1, 1]} : vector<2x512xf32> to vector<2x64xf32>
    %208 = arith.negf %207 : vector<2x64xf32>
    %209 = math.exp %208 : vector<2x64xf32>
    %cst_72 = arith.constant 1.000000e+00 : f32
    %210 = vector.broadcast %cst_72 : f32 to vector<2x64xf32>
    %211 = arith.addf %210, %209 : vector<2x64xf32>
    %212 = arith.divf %210, %211 : vector<2x64xf32>
    %213 = arith.mulf %204, %185 : vector<2x64xf32>
    %214 = arith.mulf %198, %206 : vector<2x64xf32>
    %215 = arith.addf %213, %214 : vector<2x64xf32>
    %216 = math.tanh %215 : vector<2x64xf32>
    %217 = arith.mulf %212, %216 : vector<2x64xf32>
    %c12_73 = arith.constant 12 : index
    %c0_74 = arith.constant 0 : index
    %218 = vector.load %arg10[%c12_73, %c0_74] : memref<16x64xf32, #tpu.memory_space<vmem>>, vector<2x64xf32>
    tpu.vector_store %arg10[%c12_73, %c0_74], %217 {strides = array<i32>} : memref<16x64xf32, #tpu.memory_space<vmem>>, vector<2x64xf32>,
    %c14 = arith.constant 14 : index
    %c0_75 = arith.constant 0 : index
    %219 = vector.load %arg9[%c14, %c0_75] : memref<16x512xf32, #tpu.memory_space<vmem>>, vector<2x512xf32>
    %c0_76 = arith.constant 0 : index
    %c0_77 = arith.constant 0 : index
    %220 = vector.load %arg2[%c0_76, %c0_77] : memref<64x512xf32, #tpu.memory_space<vmem>>, vector<64x512xf32>
    %cst_78 = arith.constant dense<0.000000e+00> : vector<2x512xf32>
    %221 = tpu.matmul %217, %220, %cst_78 {dimension_numbers = #tpu.dot_dimension_numbers<[1], [0], [0], [1], [0, 0, 1, 1], [], []>} : vector<2x64xf32>, vector<64x512xf32>, vector<2x512xf32> -> vector<2x512xf32>
    %222 = arith.addf %219, %221 : vector<2x512xf32>
    %223 = vector.extract_strided_slice %222 {offsets = [0, 0], sizes = [2, 64], strides = [1, 1]} : vector<2x512xf32> to vector<2x64xf32>
    %224 = arith.negf %223 : vector<2x64xf32>
    %225 = math.exp %224 : vector<2x64xf32>
    %cst_79 = arith.constant 1.000000e+00 : f32
    %226 = vector.broadcast %cst_79 : f32 to vector<2x64xf32>
    %227 = arith.addf %226, %225 : vector<2x64xf32>
    %228 = arith.divf %226, %227 : vector<2x64xf32>
    %229 = vector.extract_strided_slice %222 {offsets = [0, 128], sizes = [2, 64], strides = [1, 1]} : vector<2x512xf32> to vector<2x64xf32>
    %230 = arith.negf %229 : vector<2x64xf32>
    %231 = math.exp %230 : vector<2x64xf32>
    %cst_80 = arith.constant 1.000000e+00 : f32
    %232 = vector.broadcast %cst_80 : f32 to vector<2x64xf32>
    %233 = arith.addf %232, %231 : vector<2x64xf32>
    %234 = arith.divf %232, %233 : vector<2x64xf32>
    %235 = vector.extract_strided_slice %222 {offsets = [0, 256], sizes = [2, 64], strides = [1, 1]} : vector<2x512xf32> to vector<2x64xf32>
    %236 = math.tanh %235 : vector<2x64xf32>
    %237 = vector.extract_strided_slice %222 {offsets = [0, 384], sizes = [2, 64], strides = [1, 1]} : vector<2x512xf32> to vector<2x64xf32>
    %238 = arith.negf %237 : vector<2x64xf32>
    %239 = math.exp %238 : vector<2x64xf32>
    %cst_81 = arith.constant 1.000000e+00 : f32
    %240 = vector.broadcast %cst_81 : f32 to vector<2x64xf32>
    %241 = arith.addf %240, %239 : vector<2x64xf32>
    %242 = arith.divf %240, %241 : vector<2x64xf32>
    %243 = arith.mulf %234, %215 : vector<2x64xf32>
    %244 = arith.mulf %228, %236 : vector<2x64xf32>
    %245 = arith.addf %243, %244 : vector<2x64xf32>
    %246 = math.tanh %245 : vector<2x64xf32>
    %247 = arith.mulf %242, %246 : vector<2x64xf32>
    %c14_82 = arith.constant 14 : index
    %c0_83 = arith.constant 0 : index
    %248 = vector.load %arg10[%c14_82, %c0_83] : memref<16x64xf32, #tpu.memory_space<vmem>>, vector<2x64xf32>
    tpu.vector_store %arg10[%c14_82, %c0_83], %247 {strides = array<i32>} : memref<16x64xf32, #tpu.memory_space<vmem>>, vector<2x64xf32>,
    %c0_84 = arith.constant 0 : index
    %c0_85 = arith.constant 0 : index
    %249 = vector.load %arg6[%c0_84, %c0_85] : memref<16x16xf32, #tpu.memory_space<vmem>>, vector<16x16xf32>
    %c0_86 = arith.constant 0 : index
    %c0_87 = arith.constant 0 : index
    %250 = vector.load %arg10[%c0_86, %c0_87] : memref<16x64xf32, #tpu.memory_space<vmem>>, vector<16x64xf32>
    %cst_88 = arith.constant dense<0.000000e+00> : vector<16x64xf32>
    %251 = tpu.matmul %249, %250, %cst_88 {dimension_numbers = #tpu.dot_dimension_numbers<[1], [0], [0], [1], [0, 0, 1, 1], [], []>} : vector<16x16xf32>, vector<16x64xf32>, vector<16x64xf32> -> vector<16x64xf32>
    %c0_89 = arith.constant 0 : index
    %c0_90 = arith.constant 0 : index
    %252 = vector.load %arg7[%c0_89, %c0_90] : memref<64x128xf32, #tpu.memory_space<vmem>>, vector<64x128xf32>
    %cst_91 = arith.constant dense<0.000000e+00> : vector<16x128xf32>
    %253 = tpu.matmul %251, %252, %cst_91 {dimension_numbers = #tpu.dot_dimension_numbers<[1], [0], [0], [1], [0, 0, 1, 1], [], []>} : vector<16x64xf32>, vector<64x128xf32>, vector<16x128xf32> -> vector<16x128xf32>
    %c0_92 = arith.constant 0 : index
    %c0_93 = arith.constant 0 : index
    %254 = vector.load %arg8[%c0_92, %c0_93] : memref<16x128xf32, #tpu.memory_space<vmem>>, vector<16x128xf32>
    tpu.vector_store %arg8[%c0_92, %c0_93], %253 {strides = array<i32>} : memref<16x128xf32, #tpu.memory_space<vmem>>, vector<16x128xf32>,
    return
  }
}

</mosaic_0001>

<bundles_post_ra>
// kernel: rnn_model_forward.1
= control target key start
LH: loop header
LB: loop body
LE: loop exit
PB: predicated region body
PF: predicated region fallthrough
CT: control target
= control target key end

     0   :  { %v2713_v3 = vmov 0.0   ;;  %vm69_vm0 = vcmask 261120   ;;  %vm276_vm1 = vcmask 523264   ;;  %vm450_vm2 = vcmask 517120   ;;  %s3322_s1 = inlined_call_operand.vmem [shape: f32[32,512], index: 1, kind: input, shape index: {}]   ;;  %s3323_s2 = inlined_call_operand.vmem [shape: f32[64,512], index: 2, kind: input, shape index: {}]   ;;  %s3324_s0 = inlined_call_operand.vmem [shape: f32[16,32], index: 0, kind: input, shape index: {}]   ;;  %s3325_s4 = inlined_call_operand.vmem [shape: f32[2,64], index: 4, kind: input, shape index: {}]   ;;  %s3326_s3 = inlined_call_operand.vmem [shape: f32[1,512], index: 3, kind: input, shape index: {}]   ;;  %s3327_s5 = inlined_call_operand.vmem [shape: f32[2,64], index: 5, kind: input, shape index: {}]   ;;  %s3328_s6 = inlined_call_operand.vmem [shape: f32[16,16], index: 6, kind: input, shape index: {}]   ;;  %s3329_s7 = inlined_call_operand.vmem [shape: f32[64,128], index: 7, kind: input, shape index: {}]   ;;  %s3330_s8 = inlined_call_operand.vmem [shape: f32[16,128], index: 8, kind: output, shape index: {}]  }
   0x1   :  { %v32_v0 = vld [vmem:[%s3322_s1 + $0x8] sm:$0xff]  ;;  %v31_v2 = vld [vmem:[%s3322_s1] sm:$0xff]  ;;  %140 = vmatprep.mubr.f32.mxu0 %v2713_v3  ;;  %415 = vmatprep.mubr.f32.mxu1 %v2713_v3  ;;  %v34_v12 = vld [vmem:[%s3322_s1 + $0x18] sm:$0xff]  ;;  %vm676_vm3 = vcmask 519170   ;;  %vm903_vm4 = vcmask 521220   ;;  %vm1130_vm5 = vcmask 523270  }
   0x2   :  { %v36_v1 = vld [vmem:[%s3322_s1 + $0x28] sm:$0xff]  ;;  %v35_v5 = vld [vmem:[%s3322_s1 + $0x20] sm:$0xff]  ;;  %v38_v13 = vld [vmem:[%s3322_s1 + $0x38] sm:$0xff]  ;;  %vm2027_vm6 = vcmask 130048  }
   0x3   :  { %v2292_v4 = vpack.c.bf16 %v36_v1, %v32_v0  ;;  %v40_v6 = vld [vmem:[%s3322_s1 + $0x48] sm:$0xff]  ;;  %v2294_v8 = vpack.c.bf16 %v35_v5, %v31_v2  ;;  %v39_v10 = vld [vmem:[%s3322_s1 + $0x40] sm:$0xff]  ;;  %v33_v15 = vld [vmem:[%s3322_s1 + $0x10] sm:$0xff]  ;;  %v2300_v18 = vpack.c.bf16 %v38_v13, %v34_v12  ;;  %v49_v13 = vlaneseq }
   0x4   :  { %v44_v7 = vld [vmem:[%s3322_s1 + $0x68] sm:$0xff]  ;;  %v43_v11 = vld [vmem:[%s3322_s1 + $0x60] sm:$0xff]  ;;  %v247_v16 = vld [vmem:[%s3323_s2 + $0x18] sm:$0xff] }
   0x5   :  { %v2296_v9 = vpack.c.bf16 %v44_v7, %v40_v6  ;;  %2293 = vmatprep.subr.bf16.mxu0 %v2292_v4  ;;  %v2298_v14 = vpack.c.bf16 %v43_v11, %v39_v10  ;;  %v251_v17 = vld [vmem:[%s3323_s2 + $0x38] sm:$0xff]  ;;  %v37_v19 = vld [vmem:[%s3322_s1 + $0x30] sm:$0xff]  ;;  %v29_v26 = vld [vmem:[%s3324_s0] sm:$0xff] }
   0x6   :  { %2295 = vmatpush1.bf16.msra.mxu0 %v2294_v8  ;;  %v2803_v20 = vpack.c.bf16 %v251_v17, %v247_v16  ;;  %v246_v21 = vld [vmem:[%s3323_s2 + $0x10] sm:$0xff]  ;;  %v42_v24 = vld [vmem:[%s3322_s1 + $0x58] sm:$0xff]  ;;  %v2302_v29 = vpack.c.bf16 %v37_v19, %v33_v15  ;;  %v245_v37 = vld [vmem:[%s3323_s2 + $0x8] sm:$0xff] }
   0x7   :  { %2297 = vmatprep.subr.bf16.mxu0 %v2296_v9  ;;  %v250_v22 = vld [vmem:[%s3323_s2 + $0x30] sm:$0xff]  ;;  %v46_v25 = vld [vmem:[%s3322_s1 + $0x78] sm:$0xff]  ;;  %v249_v38 = vld [vmem:[%s3323_s2 + $0x28] sm:$0xff] }
   0x8   :  { %v2811_v23 = vpack.c.bf16 %v250_v22, %v246_v21  ;;  %2325 = vmatprep.subr.bf16.mxu1 %v2803_v20  ;;  %v255_v27 = vld [vmem:[%s3323_s2 + $0x58] sm:$0xff]  ;;  %v41_v30 = vld [vmem:[%s3322_s1 + $0x50] sm:$0xff]  ;;  %v2304_v34 = vpack.c.bf16 %v46_v25, %v42_v24  ;;  %v30_v44 = vld [vmem:[%s3324_s0 + $0x8] sm:$0xff]  ;;  %v2879_v48 = vpack.c.bf16 %v249_v38, %v245_v37 }
   0x9   :  { %v259_v28 = vld [vmem:[%s3323_s2 + $0x78] sm:$0xff]  ;;  %v254_v32 = vld [vmem:[%s3323_s2 + $0x50] sm:$0xff]  ;;  %v244_v46 = vld [vmem:[%s3323_s2] sm:$0xff] }
   0xa   :  { %2299 = vmatpush1.bf16.msra.mxu0 %v2298_v14  ;;  %2327 = vmatpush1.bf16.msra.mxu1 %v2811_v23  ;;  %v2833_v31 = vpack.c.bf16 %v259_v28, %v255_v27  ;;  %v258_v33 = vld [vmem:[%s3323_s2 + $0x70] sm:$0xff]  ;;  %v263_v39 = vld [vmem:[%s3323_s2 + $0x98] sm:$0xff]  ;;  %v248_v49 = vld [vmem:[%s3323_s2 + $0x20] sm:$0xff]  ;;  %v50_v14 = vshrl.u32 %v49_v13, 7 }
   0xb   :  { %2301 = vmatprep.subr.bf16.mxu0 %v2300_v18  ;;  %v45_v35 = vld [vmem:[%s3322_s1 + $0x70] sm:$0xff]  ;;  %v2844_v36 = vpack.c.bf16 %v258_v33, %v254_v32  ;;  %v267_v40 = vld [vmem:[%s3323_s2 + $0xb8] sm:$0xff]  ;;  %v253_v51 = vld [vmem:[%s3323_s2 + $0x48] sm:$0xff]  ;;  %v2906_v57 = vpack.c.bf16 %v248_v49, %v244_v46 }
   0xc   :  { %2329 = vmatprep.subr.bf16.mxu1 %v2833_v31  ;;  %v262_v41 = vld [vmem:[%s3323_s2 + $0x90] sm:$0xff]  ;;  %v2863_v42 = vpack.c.bf16 %v267_v40, %v263_v39  ;;  %v2306_v45 = vpack.c.bf16 %v45_v35, %v41_v30  ;;  %v271_v47 = vld [vmem:[%s3323_s2 + $0xd8] sm:$0xff]  ;;  %v257_v53 = vld [vmem:[%s3323_s2 + $0x68] sm:$0xff]  ;;  %v51_v15 = vsub.s32 0, %v50_v14  ;;  %v55_v17 = vsub.s32 1, %v50_v14 }
   0xd   :  { %2204 = vmatmul.mubr.msk.f32.vlgmr.msra.gmra.mrb[0].mxu0 %vm69_vm0, %v29_v26  ;;  %v266_v43 = vld [vmem:[%s3323_s2 + $0xb0] sm:$0xff]  ;;  %v275_v52 = vld [vmem:[%s3323_s2 + $0xf8] sm:$0xff]  ;;  %v2910_v58 = vpack.c.bf16 %v257_v53, %v253_v51  ;;  %v252_v59 = vld [vmem:[%s3323_s2 + $0x40] sm:$0xff]  ;;  %v59_v25 = vsub.s32 2, %v50_v14  ;;  %v63_v27 = vsub.s32 3, %v50_v14 }
   0xe   :  { %2303 = vmatpush1.bf16.msra.mxu0 %v2302_v29  ;;  %146 = vmatprep.mubr.f32.mxu0 %v2713_v3  ;;  %v2884_v50 = vpack.c.bf16 %v266_v43, %v262_v41  ;;  %v2896_v54 = vpack.c.bf16 %v275_v52, %v271_v47  ;;  %v270_v55 = vld [vmem:[%s3323_s2 + $0xd0] sm:$0xff]  ;;  %v256_v60 = vld [vmem:[%s3323_s2 + $0x60] sm:$0xff]  ;;  %v261_v62 = vld [vmem:[%s3323_s2 + $0x88] sm:$0xff] }
   0xf   :  { %2305 = vmatprep.subr.bf16.mxu0 %v2304_v34  ;;  %2331 = vmatpush1.bf16.msra.mxu1 %v2844_v36  ;;  %v274_v56 = vld [vmem:[%s3323_s2 + $0xf0] sm:$0xff]  ;;  %v265_v63 = vld [vmem:[%s3323_s2 + $0xa8] sm:$0xff]  ;;  %v2929_v0 = vpack.c.bf16 %v256_v60, %v252_v59  ;;  %v260_v2 = vld [vmem:[%s3323_s2 + $0x80] sm:$0xff] }
  0x10   :  { %2333 = vmatprep.subr.bf16.mxu1 %v2863_v42  ;;  %v2918_v61 = vpack.c.bf16 %v274_v56, %v270_v55  ;;  %v2934_v1 = vpack.c.bf16 %v265_v63, %v261_v62  ;;  %v264_v4 = vld [vmem:[%s3323_s2 + $0xa0] sm:$0xff]  ;;  %v269_v6 = vld [vmem:[%s3323_s2 + $0xc8] sm:$0xff] }
  0x11   :  { %2205 = vmatmul.mubr.msk.f32.gmra.mrb[2].mxu0 %vm69_vm0, %v30_v44  ;;  %v238_v5 = vld [vmem:[%s3325_s4] sm:$0x3]  ;;  %v273_v7 = vld [vmem:[%s3323_s2 + $0xe8] sm:$0xff]  ;;  %v2954_v8 = vpack.c.bf16 %v264_v4, %v260_v2 }
  0x12   :  { %2307 = vmatpush1.bf16.msra.mxu0 %v2306_v45  ;;  %217 = vmatprep.mubr.f32.mxu0 %v2713_v3  ;;  %v2958_v9 = vpack.c.bf16 %v273_v7, %v269_v6  ;;  %v268_v10 = vld [vmem:[%s3323_s2 + $0xc0] sm:$0xff] }
  0x13   :  { %2309 = vmatprep.subr.bf16.mxu0 %v2879_v48  ;;  %2335 = vmatpush1.bf16.msra.mxu1 %v2884_v50  ;;  %v272_v11 = vld [vmem:[%s3323_s2 + $0xe0] sm:$0xff] }
  0x14   :  { %2337 = vmatprep.subr.bf16.mxu1 %v2896_v54  ;;  %v2971_v12 = vpack.c.bf16 %v272_v11, %v268_v10  ;;  %v47_v16 = vld [vmem:[%s3326_s3] sm:$0xf] }
  0x15   :  { %2206 = vmatmul.mubr.msk.f32.vlgmr.msra.gmra.mrb[4].mxu0 %vm69_vm0, %v29_v26  ;;  %v52_v18 = vrot.slane %v47_v16, %v51_v15  ;;  %v56_v19 = vrot.slane %v47_v16, %v55_v17  ;;  %v60_v32 = vrot.slane %v47_v16, %v59_v25  ;;  %v64_v34 = vrot.slane %v47_v16, %v63_v27  ;;  %v239_v14 = vld [vmem:[%s3327_s5] sm:$0x3] }
  0x16   :  { %2311 = vmatpush1.bf16.msra.mxu0 %v2906_v57  ;;  %223 = vmatprep.mubr.f32.mxu0 %v2713_v3 }
  0x17   :  { %2313 = vmatprep.subr.bf16.mxu0 %v2910_v58  ;;  %2339 = vmatpush1.bf16.msra.mxu1 %v2918_v61 }
  0x18   :  { %2357 = vmatprep.subr.bf16.mxu1 %v2803_v20 }
  0x19   :  { %2207 = vmatmul.mubr.msk.f32.gmra.mrb[6].mxu0 %vm69_vm0, %v30_v44 }
  0x1a   :  { %2315 = vmatpush1.bf16.msra.mxu0 %v2929_v0  ;;  %2209 = vmatmul.mubr.msk.f32.vlgmr.msra.gmra.mrb[0].mxu1 %vm276_vm1, %v238_v5 }
  0x1b   :  { %2317 = vmatprep.subr.bf16.mxu0 %v2934_v1  ;;  %344 = vmatprep.mubr.f32.mxu0 %v2713_v3 }
  0x1c   :  { %2359 = vmatpush1.bf16.msra.mxu1 %v2811_v23  ;;  %626 = vmatprep.mubr.f32.mxu1 %v2713_v3 }
  0x1d   :  { %2361 = vmatprep.subr.bf16.mxu1 %v2833_v31 }
  0x1e   :  { %2319 = vmatpush1.bf16.msra.mxu0 %v2954_v8 }
  0x1f   :  { %2321 = vmatprep.subr.bf16.mxu0 %v2958_v9 }
  0x20   :  { %2363 = vmatpush1.bf16.msra.mxu1 %v2844_v36 }
  0x21   :  { %2365 = vmatprep.subr.bf16.mxu1 %v2863_v42 }
  0x22   :  { %2323 = vmatpush1.bf16.msra.mxu0 %v2971_v12 }
  0x23   :  { %2341 = vmatprep.subr.bf16.mxu0 %v2879_v48 }
  0x24   :  { %2367 = vmatpush1.bf16.msra.mxu1 %v2884_v50 }
  0x25   :  { %2208 = vmatmul.mubr.msk.f32.vlgmr.msra.gmra.mrb[8].mxu0 %vm276_vm1, %v238_v5  ;;  %2369 = vmatprep.subr.bf16.mxu1 %v2896_v54 }
  0x26   :  { %2343 = vmatpush1.bf16.msra.mxu0 %v2906_v57  ;;  %555 = vmatprep.mubr.f32.mxu0 %v2713_v3 }
  0x27   :  { %2345 = vmatprep.subr.bf16.mxu0 %v2910_v58 }
  0x28   :  { %2371 = vmatpush1.bf16.msra.mxu1 %v2918_v61 }
  0x29   :  { %2389 = vmatprep.subr.bf16.mxu1 %v2803_v20 }
  0x2a   :  { %2347 = vmatpush1.bf16.msra.mxu0 %v2929_v0 }
  0x2b   :  { %2349 = vmatprep.subr.bf16.mxu0 %v2934_v1 }
  0x2e   :  { %2351 = vmatpush1.bf16.msra.mxu0 %v2954_v8 }
  0x2f   :  { %2353 = vmatprep.subr.bf16.mxu0 %v2958_v9 }
  0x32   :  { %2355 = vmatpush1.bf16.msra.mxu0 %v2971_v12 }
  0x33   :  { %2373 = vmatprep.subr.bf16.mxu0 %v2879_v48 }
  0xe0   :  { %v142_v21 = vpop.f32.mrb[0].mxu0 }
  0xe1   :  { %v143_v22 = vadd.f32 %v142_v21, %v52_v18  ;;  %v144_v24 = vpop.f32.mrb[1].mxu0 }
  0xe2   :  { %v145_v26 = vadd.f32 %v144_v24, %v56_v19 }
  0xe3   :  { %230 = vst [vmem:[#allocation2] sm:$0xff] %v143_v22 }
  0xe4   :  { %231 = vst [vmem:[#allocation2 + $0x8] sm:$0xff] %v145_v26  ;;  %v148_v28 = vpop.f32.mrb[2].mxu0 }
  0xe5   :  { %v149_v29 = vadd.f32 %v148_v28, %v52_v18  ;;  %v150_v30 = vpop.f32.mrb[3].mxu0 }
  0xe6   :  { %v151_v33 = vadd.f32 %v150_v30, %v56_v19 }
  0xe7   :  { %234 = vst [vmem:[#allocation2 + $0x20] sm:$0xff] %v149_v29 }
  0xe8   :  { %235 = vst [vmem:[#allocation2 + $0x28] sm:$0xff] %v151_v33  ;;  %v219_v35 = vpop.f32.mrb[4].mxu0 }
  0xe9   :  { %v220_v37 = vadd.f32 %v219_v35, %v60_v32  ;;  %v221_v38 = vpop.f32.mrb[5].mxu0 }
  0xea   :  { %v222_v39 = vadd.f32 %v221_v38, %v64_v34  ;;  %v240_v47 = vld [vmem:[#allocation2] sm:$0x3] }
  0xeb   :  { %232 = vst [vmem:[#allocation2 + $0x10] sm:$0xff] %v220_v37  ;;  %v241_v52 = vld [vmem:[#allocation2 + $0x8] sm:$0x3]  ;;  %v453_v35 = vld [vmem:[#allocation2 + $0x8] sm:$0xc] }
  0xec   :  { %233 = vst [vmem:[#allocation2 + $0x18] sm:$0xff] %v222_v39  ;;  %v225_v40 = vpop.f32.mrb[6].mxu0 }
  0xed   :  { %v417_v41 = vpop.f32.mrb[0].mxu1  ;;  %v226_v43 = vadd.f32 %v225_v40, %v60_v32  ;;  %v227_v44 = vpop.f32.mrb[7].mxu0  ;;  %v452_v32 = vld [vmem:[#allocation2] sm:$0xc] }
  0xee   :  { %v419_v45 = vpop.f32.mrb[1].mxu1  ;;  %v228_v46 = vadd.f32 %v227_v44, %v64_v34 }
  0xef   :  { %236 = vst [vmem:[#allocation2 + $0x30] sm:$0xff] %v226_v43 }
  0xf0   :  { %237 = vst [vmem:[#allocation2 + $0x38] sm:$0xff] %v228_v46 }
  0xf2   :  { %v242_v63 = vld [vmem:[#allocation2 + $0x10] sm:$0x3] }
  0xf3   :  { %v243_v60 = vld [vmem:[#allocation2 + $0x18] sm:$0x3]  ;;  %v424_v4 = vadd.f32 %v417_v41, %v242_v63  ;;  %v455_v41 = vld [vmem:[#allocation2 + $0x18] sm:$0xc] }
  0xf4   :  { %v425_v62 = vadd.f32 %v419_v45, %v243_v60  ;;  %v454_v45 = vld [vmem:[#allocation2 + $0x10] sm:$0xc] }
  0xf6   :  { %v2212_v2 = vmul.f32 -1.442695, %v425_v62 }
  0xf8   :  { %v346_v49 = vpop.f32.mrb[8].mxu0 }
  0xf9   :  { %v422_v51 = vadd.f32 %v346_v49, %v240_v47  ;;  %v348_v53 = vpop.f32.mrb[9].mxu0 }
  0xfa   :  { %v423_v55 = vadd.f32 %v348_v53, %v241_v52 }
  0xfb   :  { %v2210_v56 = vmul.f32 -1.442695, %v422_v51 }
  0xfc   :  { %v2211_v59 = vmul.f32 -1.442695, %v423_v55 }
  0xfd   :  { %2585 = vpow2.f32 %v2210_v56 }
  0xfe   :  { %2587 = vpow2.f32 %v2211_v59 }
  0xff   :  { %2589 = vpow2.f32 %v2212_v2 }
 0x100   :  { %2591 = vtanh.f32 %v424_v4 }
 0x107   :  { %v2586_v5 = vpop.eup %2585 }
 0x108   :  { %v2588_v6 = vpop.eup %2587  ;;  %v429_v7 = vadd.f32 1.0, %v2586_v5 }
 0x109   :  { %v435_v10 = vadd.f32 1.0, %v2588_v6  ;;  %v2590_v11 = vpop.eup %2589 }
 0x10a   :  { %2593 = vrcp.f32 %v429_v7  ;;  %v2592_v13 = vpop.eup %2591  ;;  %v442_v17 = vadd.f32 1.0, %v2590_v11 }
 0x10b   :  { %2595 = vrcp.f32 %v435_v10 }
 0x10c   :  { %2597 = vrcp.f32 %v442_v17 }
 0x114   :  { %v2594_v15 = vpop.eup %2593 }
 0x115   :  { %v2596_v16 = vpop.eup %2595  ;;  %v446_v18 = vmul.f32 %v2594_v15, %v2592_v13 }
 0x116   :  { %v445_v19 = vmul.f32 %v2596_v16, %v239_v14  ;;  %v2598_v22 = vpop.eup %2597 }
 0x118   :  { %v2998_v21 = vadd.f32 %v446_v18, %v445_v19  ;;  %v678_v18 = vld [vmem:[#allocation2] sm:$0x30] }
 0x11a   :  { %2599 = vtanh.f32 %v2998_v21  ;;  %v669_v60 = vrot.slane %v2998_v21, 6 }
 0x124   :  { %v2600_v24 = vpop.eup %2599 }
 0x125   :  { %v449_v25 = vmul.f32 %v2600_v24, %v2598_v22  ;;  %v679_v22 = vld [vmem:[#allocation2 + $0x8] sm:$0x30] }
 0x127   :  { %451 = vst.msk [vmem:[#allocation3] sm:$0x3] %vm450_vm2, %v449_v25  ;;  %2213 = vmatmul.mubr.msk.f32.vlgmr.msra.gmra.mrb[10].mxu0 %vm276_vm1, %v449_v25  ;;  %2214 = vmatmul.mubr.msk.f32.vlgmr.msra.gmra.mrb[2].mxu1 %vm276_vm1, %v449_v25 }
 0x128   :  { %2375 = vmatpush1.bf16.msra.mxu0 %v2906_v57  ;;  %2391 = vmatpush1.bf16.msra.mxu1 %v2811_v23 }
 0x129   :  { %2377 = vmatprep.subr.bf16.mxu0 %v2910_v58  ;;  %2393 = vmatprep.subr.bf16.mxu1 %v2833_v31 }
 0x12a   :  { %782 = vmatprep.mubr.f32.mxu0 %v2713_v3  ;;  %853 = vmatprep.mubr.f32.mxu1 %v2713_v3 }
 0x12c   :  { %2379 = vmatpush1.bf16.msra.mxu0 %v2929_v0  ;;  %2395 = vmatpush1.bf16.msra.mxu1 %v2844_v36 }
 0x12d   :  { %2381 = vmatprep.subr.bf16.mxu0 %v2934_v1  ;;  %2397 = vmatprep.subr.bf16.mxu1 %v2863_v42 }
 0x130   :  { %2383 = vmatpush1.bf16.msra.mxu0 %v2954_v8  ;;  %2399 = vmatpush1.bf16.msra.mxu1 %v2884_v50 }
 0x131   :  { %2385 = vmatprep.subr.bf16.mxu0 %v2958_v9  ;;  %2401 = vmatprep.subr.bf16.mxu1 %v2896_v54 }
 0x134   :  { %2387 = vmatpush1.bf16.msra.mxu0 %v2971_v12  ;;  %2403 = vmatpush1.bf16.msra.mxu1 %v2918_v61 }
 0x135   :  { %2405 = vmatprep.subr.bf16.mxu0 %v2879_v48  ;;  %2421 = vmatprep.subr.bf16.mxu1 %v2803_v20 }
 0x1fa   :  { %v557_v26 = vpop.f32.mrb[10].mxu0  ;;  %v628_v27 = vpop.f32.mrb[2].mxu1 }
 0x1fb   :  { %v637_v28 = vrot.slane %v557_v26, 6  ;;  %v559_v29 = vpop.f32.mrb[11].mxu0  ;;  %v630_v30 = vpop.f32.mrb[3].mxu1  ;;  %v639_v44 = vrot.slane %v628_v27, 6 }
 0x1fc   :  { %v638_v33 = vrot.slane %v559_v29, 6  ;;  %v640_v40 = vrot.slane %v630_v30, 6  ;;  %v680_v30 = vld [vmem:[#allocation2 + $0x10] sm:$0x30] }
 0x1fd   :  { %v645_v34 = vadd.f32 %v637_v28, %v452_v32  ;;  %v647_v47 = vadd.f32 %v639_v44, %v454_v45  ;;  %v681_v28 = vld [vmem:[#allocation2 + $0x18] sm:$0x30] }
 0x1fe   :  { %v646_v37 = vadd.f32 %v638_v33, %v453_v35  ;;  %v648_v43 = vadd.f32 %v640_v40, %v455_v41 }
 0x1ff   :  { %v2215_v38 = vmul.f32 -1.442695, %v645_v34 }
 0x200   :  { %v2216_v39 = vmul.f32 -1.442695, %v646_v37  ;;  %v2217_v46 = vmul.f32 -1.442695, %v648_v43 }
 0x201   :  { %2601 = vpow2.f32 %v2215_v38 }
 0x202   :  { %2603 = vpow2.f32 %v2216_v39 }
 0x203   :  { %2605 = vpow2.f32 %v2217_v46 }
 0x204   :  { %2607 = vtanh.f32 %v647_v47 }
 0x20b   :  { %v2602_v49 = vpop.eup %2601 }
 0x20c   :  { %v2604_v51 = vpop.eup %2603  ;;  %v652_v52 = vadd.f32 1.0, %v2602_v49 }
 0x20d   :  { %v658_v53 = vadd.f32 1.0, %v2604_v51  ;;  %v2606_v55 = vpop.eup %2605 }
 0x20e   :  { %2609 = vrcp.f32 %v652_v52  ;;  %v2608_v56 = vpop.eup %2607  ;;  %v665_v2 = vadd.f32 1.0, %v2606_v55  ;;  %v906_v55 = vld [vmem:[#allocation2 + $0x8] sm:$0xc0] }
 0x20f   :  { %2611 = vrcp.f32 %v658_v53 }
 0x210   :  { %2613 = vrcp.f32 %v665_v2 }
 0x218   :  { %v2610_v59 = vpop.eup %2609 }
 0x219   :  { %v2612_v62 = vpop.eup %2611  ;;  %v672_v63 = vmul.f32 %v2610_v59, %v2608_v56 }
 0x21a   :  { %v671_v4 = vmul.f32 %v2612_v62, %v669_v60  ;;  %v2614_v6 = vpop.eup %2613  ;;  %v907_v60 = vld [vmem:[#allocation2 + $0x10] sm:$0xc0] }
 0x21c   :  { %v3023_v5 = vadd.f32 %v672_v63, %v671_v4 }
 0x21e   :  { %2615 = vtanh.f32 %v3023_v5  ;;  %v896_v41 = vrot.slane %v3023_v5, 6 }
 0x228   :  { %v2616_v7 = vpop.eup %2615 }
 0x229   :  { %v675_v10 = vmul.f32 %v2616_v7, %v2614_v6 }
 0x22b   :  { %677 = vst.msk [vmem:[#allocation3] sm:$0xc] %vm676_vm3, %v675_v10  ;;  %v715_v11 = vrot.slane %v675_v10, 2 }
 0x22d   :  { %2218 = vmatmul.mubr.msk.f32.vlgmr.msra.gmra.mrb[12].mxu0 %vm276_vm1, %v715_v11  ;;  %2219 = vmatmul.mubr.msk.f32.vlgmr.msra.gmra.mrb[4].mxu1 %vm276_vm1, %v715_v11 }
 0x22e   :  { %2407 = vmatpush1.bf16.msra.mxu0 %v2906_v57  ;;  %2423 = vmatpush1.bf16.msra.mxu1 %v2811_v23 }
 0x22f   :  { %2409 = vmatprep.subr.bf16.mxu0 %v2910_v58  ;;  %2425 = vmatprep.subr.bf16.mxu1 %v2833_v31 }
 0x230   :  { %1009 = vmatprep.mubr.f32.mxu0 %v2713_v3  ;;  %1080 = vmatprep.mubr.f32.mxu1 %v2713_v3 }
 0x232   :  { %2411 = vmatpush1.bf16.msra.mxu0 %v2929_v0  ;;  %2427 = vmatpush1.bf16.msra.mxu1 %v2844_v36 }
 0x233   :  { %2413 = vmatprep.subr.bf16.mxu0 %v2934_v1  ;;  %2429 = vmatprep.subr.bf16.mxu1 %v2863_v42 }
 0x236   :  { %2415 = vmatpush1.bf16.msra.mxu0 %v2954_v8  ;;  %2431 = vmatpush1.bf16.msra.mxu1 %v2884_v50 }
 0x237   :  { %2417 = vmatprep.subr.bf16.mxu0 %v2958_v9  ;;  %2433 = vmatprep.subr.bf16.mxu1 %v2896_v54 }
 0x23a   :  { %2419 = vmatpush1.bf16.msra.mxu0 %v2971_v12  ;;  %2435 = vmatpush1.bf16.msra.mxu1 %v2918_v61 }
 0x23b   :  { %2437 = vmatprep.subr.bf16.mxu0 %v2879_v48  ;;  %2453 = vmatprep.subr.bf16.mxu1 %v2803_v20 }
 0x300   :  { %v784_v13 = vpop.f32.mrb[12].mxu0  ;;  %v855_v14 = vpop.f32.mrb[4].mxu1 }
 0x301   :  { %v864_v15 = vrot.slane %v784_v13, 4  ;;  %v786_v16 = vpop.f32.mrb[13].mxu0  ;;  %v857_v17 = vpop.f32.mrb[5].mxu1  ;;  %v866_v48 = vrot.slane %v855_v14, 4 }
 0x302   :  { %v865_v19 = vrot.slane %v786_v16, 4  ;;  %v867_v27 = vrot.slane %v857_v17, 4 }
 0x303   :  { %v872_v21 = vadd.f32 %v864_v15, %v678_v18  ;;  %v874_v32 = vadd.f32 %v866_v48, %v680_v30  ;;  %v1354_v48 = vld [vmem:[%s3323_s2 + $0x20] sm:$0xff] }
 0x304   :  { %v873_v24 = vadd.f32 %v865_v19, %v679_v22  ;;  %v875_v29 = vadd.f32 %v867_v27, %v681_v28  ;;  %v1357_v28 = vld [vmem:[%s3323_s2 + $0x38] sm:$0xff] }
 0x305   :  { %v2220_v25 = vmul.f32 -1.442695, %v872_v21 }
 0x306   :  { %v2221_v26 = vmul.f32 -1.442695, %v873_v24  ;;  %v2222_v20 = vmul.f32 -1.442695, %v875_v29  ;;  %v1351_v24 = vld [vmem:[%s3323_s2 + $0x8] sm:$0xff]  ;;  %v1350_v29 = vld [vmem:[%s3323_s2] sm:$0xff] }
 0x307   :  { %2617 = vpow2.f32 %v2220_v25  ;;  %v1355_v25 = vld [vmem:[%s3323_s2 + $0x28] sm:$0xff] }
 0x308   :  { %2619 = vpow2.f32 %v2221_v26  ;;  %v1353_v26 = vld [vmem:[%s3323_s2 + $0x18] sm:$0xff]  ;;  %v3088_v27 = vpack.c.bf16 %v1355_v25, %v1351_v24 }
 0x309   :  { %2621 = vpow2.f32 %v2222_v20  ;;  %v3099_v30 = vpack.c.bf16 %v1357_v28, %v1353_v26  ;;  %v3101_v20 = vpack.c.bf16 %v1354_v48, %v1350_v29 }
 0x30a   :  { %2623 = vtanh.f32 %v874_v32  ;;  %v1352_v32 = vld [vmem:[%s3323_s2 + $0x10] sm:$0xff] }
 0x311   :  { %v2618_v33 = vpop.eup %2617 }
 0x312   :  { %v2620_v34 = vpop.eup %2619  ;;  %v879_v35 = vadd.f32 1.0, %v2618_v33  ;;  %v1356_v33 = vld [vmem:[%s3323_s2 + $0x30] sm:$0xff] }
 0x313   :  { %v885_v37 = vadd.f32 1.0, %v2620_v34  ;;  %v2622_v38 = vpop.eup %2621  ;;  %v3110_v34 = vpack.c.bf16 %v1356_v33, %v1352_v32 }
 0x314   :  { %2625 = vrcp.f32 %v879_v35  ;;  %v2624_v39 = vpop.eup %2623  ;;  %v892_v45 = vadd.f32 1.0, %v2622_v38  ;;  %v1359_v35 = vld [vmem:[%s3323_s2 + $0x48] sm:$0xff]  ;;  %v1361_v38 = vld [vmem:[%s3323_s2 + $0x58] sm:$0xff] }
 0x315   :  { %2627 = vrcp.f32 %v885_v37  ;;  %v1363_v37 = vld [vmem:[%s3323_s2 + $0x68] sm:$0xff] }
 0x316   :  { %2629 = vrcp.f32 %v892_v45 }
 0x31e   :  { %v2626_v40 = vpop.eup %2625 }
 0x31f   :  { %v2628_v43 = vpop.eup %2627  ;;  %v899_v44 = vmul.f32 %v2626_v40, %v2624_v39  ;;  %v3124_v39 = vpack.c.bf16 %v1363_v37, %v1359_v35  ;;  %v1365_v40 = vld [vmem:[%s3323_s2 + $0x78] sm:$0xff] }
 0x320   :  { %v898_v46 = vmul.f32 %v2628_v43, %v896_v41  ;;  %v2630_v49 = vpop.eup %2629  ;;  %v1358_v41 = vld [vmem:[%s3323_s2 + $0x40] sm:$0xff] }
 0x321   :  { %v1362_v43 = vld [vmem:[%s3323_s2 + $0x60] sm:$0xff] }
 0x322   :  { %v3048_v47 = vadd.f32 %v899_v44, %v898_v46  ;;  %v3135_v44 = vpack.c.bf16 %v1365_v40, %v1361_v38  ;;  %v3137_v45 = vpack.c.bf16 %v1362_v43, %v1358_v41  ;;  %v1360_v46 = vld [vmem:[%s3323_s2 + $0x50] sm:$0xff] }
 0x324   :  { %2631 = vtanh.f32 %v3048_v47  ;;  %v1123_v11 = vrot.slane %v3048_v47, 6  ;;  %v1364_v47 = vld [vmem:[%s3323_s2 + $0x70] sm:$0xff] }
 0x32e   :  { %v2632_v51 = vpop.eup %2631 }
 0x32f   :  { %v902_v52 = vmul.f32 %v2632_v51, %v2630_v49  ;;  %v1367_v49 = vld [vmem:[%s3323_s2 + $0x88] sm:$0xff]  ;;  %v3149_v51 = vpack.c.bf16 %v1364_v47, %v1360_v46 }
 0x331   :  { %904 = vst.msk [vmem:[#allocation3] sm:$0x30] %vm903_vm4, %v902_v52  ;;  %v942_v53 = vrot.slane %v902_v52, 4  ;;  %v1371_v52 = vld [vmem:[%s3323_s2 + $0xa8] sm:$0xff] }
 0x333   :  { %2223 = vmatmul.mubr.msk.f32.vlgmr.msra.gmra.mrb[14].mxu0 %vm276_vm1, %v942_v53  ;;  %2224 = vmatmul.mubr.msk.f32.vlgmr.msra.gmra.mrb[6].mxu1 %vm276_vm1, %v942_v53  ;;  %v1369_v53 = vld [vmem:[%s3323_s2 + $0x98] sm:$0xff] }
 0x334   :  { %2439 = vmatpush1.bf16.msra.mxu0 %v2906_v57  ;;  %2455 = vmatpush1.bf16.msra.mxu1 %v2811_v23 }
 0x335   :  { %2441 = vmatprep.subr.bf16.mxu0 %v2910_v58  ;;  %2457 = vmatprep.subr.bf16.mxu1 %v2833_v31 }
 0x336   :  { %1236 = vmatprep.mubr.f32.mxu0 %v2713_v3  ;;  %1307 = vmatprep.mubr.f32.mxu1 %v2713_v3 }
 0x338   :  { %2443 = vmatpush1.bf16.msra.mxu0 %v2929_v0  ;;  %2459 = vmatpush1.bf16.msra.mxu1 %v2844_v36  ;;  %v905_v0 = vld [vmem:[#allocation2] sm:$0xc0] }
 0x339   :  { %2445 = vmatprep.subr.bf16.mxu0 %v2934_v1  ;;  %2461 = vmatprep.subr.bf16.mxu1 %v2863_v42 }
 0x33c   :  { %2447 = vmatpush1.bf16.msra.mxu0 %v2954_v8  ;;  %2463 = vmatpush1.bf16.msra.mxu1 %v2884_v50 }
 0x33d   :  { %2449 = vmatprep.subr.bf16.mxu0 %v2958_v9  ;;  %2465 = vmatprep.subr.bf16.mxu1 %v2896_v54  ;;  %v908_v54 = vld [vmem:[#allocation2 + $0x18] sm:$0xc0] }
 0x340   :  { %2451 = vmatpush1.bf16.msra.mxu0 %v2971_v12  ;;  %2467 = vmatpush1.bf16.msra.mxu1 %v2918_v61 }
 0x341   :  { %2469 = vmatprep.subr.bf16.mxu0 %v3088_v27  ;;  %2485 = vmatprep.subr.bf16.mxu1 %v3099_v30 }
 0x406   :  { %v1011_v23 = vpop.f32.mrb[14].mxu0  ;;  %v1082_v31 = vpop.f32.mrb[6].mxu1 }
 0x407   :  { %v1091_v57 = vrot.slane %v1011_v23, 2  ;;  %v1013_v36 = vpop.f32.mrb[15].mxu0  ;;  %v1084_v58 = vpop.f32.mrb[7].mxu1  ;;  %v1093_v12 = vrot.slane %v1082_v31, 2  ;;  %v1373_v23 = vld [vmem:[%s3323_s2 + $0xb8] sm:$0xff]  ;;  %v3162_v31 = vpack.c.bf16 %v1371_v52, %v1367_v49 }
 0x408   :  { %v1092_v1 = vrot.slane %v1013_v36, 2  ;;  %v1094_v59 = vrot.slane %v1084_v58, 2  ;;  %v1366_v36 = vld [vmem:[%s3323_s2 + $0x80] sm:$0xff] }
 0x409   :  { %v1099_v42 = vadd.f32 %v1091_v57, %v905_v0  ;;  %v1101_v62 = vadd.f32 %v1093_v12, %v907_v60  ;;  %v3164_v57 = vpack.c.bf16 %v1373_v23, %v1369_v53  ;;  %v1370_v58 = vld [vmem:[%s3323_s2 + $0xa0] sm:$0xff]  ;;  %v1368_v0 = vld [vmem:[%s3323_s2 + $0x90] sm:$0xff] }
 0x40a   :  { %v1100_v8 = vadd.f32 %v1092_v1, %v906_v55  ;;  %v1102_v9 = vadd.f32 %v1094_v59, %v908_v54  ;;  %v3176_v1 = vpack.c.bf16 %v1370_v58, %v1366_v36  ;;  %v1375_v55 = vld [vmem:[%s3323_s2 + $0xc8] sm:$0xff]  ;;  %v1377_v59 = vld [vmem:[%s3323_s2 + $0xd8] sm:$0xff]  ;;  %v1378_v60 = vld [vmem:[%s3323_s2 + $0xe0] sm:$0xff] }
 0x40b   :  { %v2225_v56 = vmul.f32 -1.442695, %v1099_v42  ;;  %v1372_v42 = vld [vmem:[%s3323_s2 + $0xb0] sm:$0xff]  ;;  %v1381_v54 = vld [vmem:[%s3323_s2 + $0xf8] sm:$0xff]  ;;  %v1346_v58 = vld [vmem:[#allocation2 + $0x20] sm:$0xc] }
 0x40c   :  { %v2226_v50 = vmul.f32 -1.442695, %v1100_v8  ;;  %v2227_v61 = vmul.f32 -1.442695, %v1102_v9  ;;  %v1379_v8 = vld [vmem:[%s3323_s2 + $0xe8] sm:$0xff]  ;;  %v1374_v9 = vld [vmem:[%s3323_s2 + $0xc0] sm:$0xff]  ;;  %v3202_v12 = vpack.c.bf16 %v1381_v54, %v1377_v59 }
 0x40d   :  { %2633 = vpow2.f32 %v2225_v56  ;;  %v3189_v56 = vpack.c.bf16 %v1372_v42, %v1368_v0 }
 0x40e   :  { %2635 = vpow2.f32 %v2226_v50  ;;  %v3191_v50 = vpack.c.bf16 %v1379_v8, %v1375_v55  ;;  %v1347_v55 = vld [vmem:[#allocation2 + $0x28] sm:$0xc] }
 0x40f   :  { %2637 = vpow2.f32 %v2227_v61  ;;  %v1376_v61 = vld [vmem:[%s3323_s2 + $0xd0] sm:$0xff] }
 0x410   :  { %2639 = vtanh.f32 %v1101_v62  ;;  %v1380_v62 = vld [vmem:[%s3323_s2 + $0xf0] sm:$0xff] }
 0x417   :  { %v2634_v63 = vpop.eup %2633 }
 0x418   :  { %v2636_v2 = vpop.eup %2635  ;;  %v1106_v4 = vadd.f32 1.0, %v2634_v63  ;;  %v3214_v63 = vpack.c.bf16 %v1378_v60, %v1374_v9  ;;  %v1349_v60 = vld [vmem:[#allocation2 + $0x38] sm:$0xc] }
 0x419   :  { %v1112_v5 = vadd.f32 1.0, %v2636_v2  ;;  %v2638_v6 = vpop.eup %2637  ;;  %v3218_v2 = vpack.c.bf16 %v1380_v62, %v1376_v61  ;;  %v1348_v62 = vld [vmem:[#allocation2 + $0x30] sm:$0xc] }
 0x41a   :  { %2641 = vrcp.f32 %v1106_v4  ;;  %v2640_v7 = vpop.eup %2639  ;;  %v1119_v15 = vadd.f32 1.0, %v2638_v6  ;;  %v1132_v4 = vld [vmem:[#allocation2 + $0x20] sm:$0x3] }
 0x41b   :  { %2643 = vrcp.f32 %v1112_v5 }
 0x41c   :  { %2645 = vrcp.f32 %v1119_v15 }
 0x424   :  { %v2642_v10 = vpop.eup %2641 }
 0x425   :  { %v2644_v13 = vpop.eup %2643  ;;  %v1126_v14 = vmul.f32 %v2642_v10, %v2640_v7  ;;  %v1133_v10 = vld [vmem:[#allocation2 + $0x28] sm:$0x3] }
 0x426   :  { %v1125_v16 = vmul.f32 %v2644_v13, %v1123_v11  ;;  %v2646_v18 = vpop.eup %2645 }
 0x428   :  { %v3071_v17 = vadd.f32 %v1126_v14, %v1125_v16 }
 0x42a   :  { %2647 = vtanh.f32 %v3071_v17  ;;  %v1338_v35 = vrot.slane %v3071_v17, 6 }
 0x434   :  { %v2648_v19 = vpop.eup %2647 }
 0x435   :  { %v1129_v21 = vmul.f32 %v2648_v19, %v2646_v18  ;;  %v1135_v18 = vld [vmem:[#allocation2 + $0x38] sm:$0x3] }
 0x437   :  { %1131 = vst.msk [vmem:[#allocation3] sm:$0xc0] %vm1130_vm5, %v1129_v21  ;;  %v1169_v22 = vrot.slane %v1129_v21, 6  ;;  %v1134_v21 = vld [vmem:[#allocation2 + $0x30] sm:$0x3] }
 0x439   :  { %2228 = vmatmul.mubr.msk.f32.vlgmr.msra.gmra.mrb[16].mxu0 %vm276_vm1, %v1169_v22  ;;  %2229 = vmatmul.mubr.msk.f32.vlgmr.msra.gmra.mrb[8].mxu1 %vm276_vm1, %v1169_v22 }
 0x43a   :  { %1449 = vmatprep.mubr.f32.mxu0 %v2713_v3  ;;  %1520 = vmatprep.mubr.f32.mxu1 %v2713_v3 }
 0x43b   :  { %2471 = vmatpush1.bf16.msra.mxu0 %v3101_v20  ;;  %2487 = vmatpush1.bf16.msra.mxu1 %v3110_v34 }
 0x43c   :  { %2473 = vmatprep.subr.bf16.mxu0 %v3124_v39  ;;  %2489 = vmatprep.subr.bf16.mxu1 %v3135_v44 }
 0x43f   :  { %2475 = vmatpush1.bf16.msra.mxu0 %v3137_v45  ;;  %2491 = vmatpush1.bf16.msra.mxu1 %v3149_v51 }
 0x440   :  { %2477 = vmatprep.subr.bf16.mxu0 %v3162_v31  ;;  %2493 = vmatprep.subr.bf16.mxu1 %v3164_v57 }
 0x443   :  { %2479 = vmatpush1.bf16.msra.mxu0 %v3176_v1  ;;  %2495 = vmatpush1.bf16.msra.mxu1 %v3189_v56 }
 0x444   :  { %2481 = vmatprep.subr.bf16.mxu0 %v3191_v50  ;;  %2497 = vmatprep.subr.bf16.mxu1 %v3202_v12 }
 0x447   :  { %2483 = vmatpush1.bf16.msra.mxu0 %v3214_v63  ;;  %2499 = vmatpush1.bf16.msra.mxu1 %v3218_v2 }
 0x448   :  { %2501 = vmatprep.subr.bf16.mxu0 %v3088_v27  ;;  %2517 = vmatprep.subr.bf16.mxu1 %v3099_v30 }
 0x50c   :  { %v1238_v5 = vpop.f32.mrb[16].mxu0  ;;  %v1309_v6 = vpop.f32.mrb[8].mxu1 }
 0x50d   :  { %v1314_v7 = vadd.f32 %v1238_v5, %v1132_v4  ;;  %v1240_v11 = vpop.f32.mrb[17].mxu0  ;;  %v1311_v13 = vpop.f32.mrb[9].mxu1  ;;  %v1316_v24 = vadd.f32 %v1309_v6, %v1134_v21 }
 0x50e   :  { %v1315_v14 = vadd.f32 %v1240_v11, %v1133_v10  ;;  %v1317_v19 = vadd.f32 %v1311_v13, %v1135_v18 }
 0x50f   :  { %v2230_v15 = vmul.f32 -1.442695, %v1314_v7 }
 0x510   :  { %v2231_v16 = vmul.f32 -1.442695, %v1315_v14  ;;  %v2232_v22 = vmul.f32 -1.442695, %v1317_v19 }
 0x511   :  { %2649 = vpow2.f32 %v2230_v15 }
 0x512   :  { %2651 = vpow2.f32 %v2231_v16 }
 0x513   :  { %2653 = vpow2.f32 %v2232_v22 }
 0x514   :  { %2655 = vtanh.f32 %v1316_v24 }
 0x51b   :  { %v2650_v25 = vpop.eup %2649 }
 0x51c   :  { %v2652_v26 = vpop.eup %2651  ;;  %v1321_v28 = vadd.f32 1.0, %v2650_v25 }
 0x51d   :  { %v1327_v29 = vadd.f32 1.0, %v2652_v26  ;;  %v2654_v48 = vpop.eup %2653 }
 0x51e   :  { %2657 = vrcp.f32 %v1321_v28  ;;  %v2656_v32 = vpop.eup %2655  ;;  %v1334_v40 = vadd.f32 1.0, %v2654_v48 }
 0x51f   :  { %2659 = vrcp.f32 %v1327_v29 }
 0x520   :  { %2661 = vrcp.f32 %v1334_v40 }
 0x528   :  { %v2658_v33 = vpop.eup %2657 }
 0x529   :  { %v2660_v37 = vpop.eup %2659  ;;  %v1341_v38 = vmul.f32 %v2658_v33, %v2656_v32  ;;  %v1573_v32 = vld [vmem:[#allocation2 + $0x30] sm:$0x30] }
 0x52a   :  { %v1340_v41 = vmul.f32 %v2660_v37, %v1338_v35  ;;  %v2662_v46 = vpop.eup %2661 }
 0x52c   :  { %v3226_v43 = vadd.f32 %v1341_v38, %v1340_v41 }
 0x52e   :  { %2663 = vtanh.f32 %v3226_v43  ;;  %v1563_v15 = vrot.slane %v3226_v43, 6 }
 0x538   :  { %v2664_v47 = vpop.eup %2663 }
 0x539   :  { %v1344_v49 = vmul.f32 %v2664_v47, %v2662_v46 }
 0x53b   :  { %1345 = vst.msk [vmem:[#allocation3 + $0x8] sm:$0x3] %vm450_vm2, %v1344_v49  ;;  %2233 = vmatmul.mubr.msk.f32.vlgmr.msra.gmra.mrb[18].mxu0 %vm276_vm1, %v1344_v49  ;;  %2234 = vmatmul.mubr.msk.f32.vlgmr.msra.gmra.mrb[10].mxu1 %vm276_vm1, %v1344_v49 }
 0x53c   :  { %2503 = vmatpush1.bf16.msra.mxu0 %v3101_v20  ;;  %2519 = vmatpush1.bf16.msra.mxu1 %v3110_v34 }
 0x53d   :  { %2505 = vmatprep.subr.bf16.mxu0 %v3124_v39  ;;  %2521 = vmatprep.subr.bf16.mxu1 %v3135_v44 }
 0x53e   :  { %1675 = vmatprep.mubr.f32.mxu0 %v2713_v3  ;;  %1746 = vmatprep.mubr.f32.mxu1 %v2713_v3 }
 0x540   :  { %2507 = vmatpush1.bf16.msra.mxu0 %v3137_v45  ;;  %2523 = vmatpush1.bf16.msra.mxu1 %v3149_v51 }
 0x541   :  { %2509 = vmatprep.subr.bf16.mxu0 %v3162_v31  ;;  %2525 = vmatprep.subr.bf16.mxu1 %v3164_v57 }
 0x544   :  { %2511 = vmatpush1.bf16.msra.mxu0 %v3176_v1  ;;  %2527 = vmatpush1.bf16.msra.mxu1 %v3189_v56 }
 0x545   :  { %2513 = vmatprep.subr.bf16.mxu0 %v3191_v50  ;;  %2529 = vmatprep.subr.bf16.mxu1 %v3202_v12 }
 0x548   :  { %2515 = vmatpush1.bf16.msra.mxu0 %v3214_v63  ;;  %2531 = vmatpush1.bf16.msra.mxu1 %v3218_v2 }
 0x549   :  { %2533 = vmatprep.subr.bf16.mxu0 %v3088_v27  ;;  %2549 = vmatprep.subr.bf16.mxu1 %v3099_v30 }
 0x60e   :  { %v1451_v17 = vpop.f32.mrb[18].mxu0  ;;  %v1522_v52 = vpop.f32.mrb[10].mxu1 }
 0x60f   :  { %v1531_v53 = vrot.slane %v1451_v17, 6  ;;  %v1453_v23 = vpop.f32.mrb[19].mxu0  ;;  %v1524_v36 = vpop.f32.mrb[11].mxu1  ;;  %v1533_v27 = vrot.slane %v1522_v52, 6 }
 0x610   :  { %v1532_v0 = vrot.slane %v1453_v23, 6  ;;  %v1534_v9 = vrot.slane %v1524_v36, 6 }
 0x611   :  { %v1539_v42 = vadd.f32 %v1531_v53, %v1346_v58  ;;  %v1541_v4 = vadd.f32 %v1533_v27, %v1348_v62  ;;  %v2113_v27 = vld [vmem:[%s3329_s7 + $0x20] sm:$0xff]  ;;  %v2114_v62 = vld [vmem:[%s3329_s7 + $0x28] sm:$0xff] }
 0x612   :  { %v1540_v8 = vadd.f32 %v1532_v0, %v1347_v55  ;;  %v1542_v61 = vadd.f32 %v1534_v9, %v1349_v60  ;;  %v2023_v55 = vld [vmem:[%s3328_s6] sm:$0xff]  ;;  %v2112_v60 = vld [vmem:[%s3329_s7 + $0x18] sm:$0xff] }
 0x613   :  { %v2235_v59 = vmul.f32 -1.442695, %v1539_v42 }
 0x614   :  { %v2236_v54 = vmul.f32 -1.442695, %v1540_v8  ;;  %v2237_v30 = vmul.f32 -1.442695, %v1542_v61  ;;  %v2109_v8 = vld [vmem:[%s3329_s7] sm:$0xff] }
 0x615   :  { %2665 = vpow2.f32 %v2235_v59  ;;  %v2110_v59 = vld [vmem:[%s3329_s7 + $0x8] sm:$0xff] }
 0x616   :  { %2667 = vpow2.f32 %v2236_v54  ;;  %v2111_v54 = vld [vmem:[%s3329_s7 + $0x10] sm:$0xff]  ;;  %v2568_v9 = vpack.c.bf16 %v2110_v59, %v2109_v8 }
 0x617   :  { %2669 = vpow2.f32 %v2237_v30  ;;  %v2572_v61 = vpack.c.bf16 %v2112_v60, %v2111_v54  ;;  %v2576_v30 = vpack.c.bf16 %v2114_v62, %v2113_v27 }
 0x618   :  { %2671 = vtanh.f32 %v1541_v4  ;;  %v2115_v4 = vld [vmem:[%s3329_s7 + $0x30] sm:$0xff] }
 0x61f   :  { %v2666_v5 = vpop.eup %2665 }
 0x620   :  { %v2668_v6 = vpop.eup %2667  ;;  %v1546_v7 = vadd.f32 1.0, %v2666_v5  ;;  %v2116_v5 = vld [vmem:[%s3329_s7 + $0x38] sm:$0xff] }
 0x621   :  { %v1552_v10 = vadd.f32 1.0, %v2668_v6  ;;  %v2670_v11 = vpop.eup %2669  ;;  %v2580_v6 = vpack.c.bf16 %v2116_v5, %v2115_v4 }
 0x622   :  { %2673 = vrcp.f32 %v1546_v7  ;;  %v2672_v13 = vpop.eup %2671  ;;  %v1559_v19 = vadd.f32 1.0, %v2670_v11 }
 0x623   :  { %2675 = vrcp.f32 %v1552_v10 }
 0x624   :  { %2677 = vrcp.f32 %v1559_v19  ;;  %v1798_v19 = vld [vmem:[#allocation2 + $0x28] sm:$0xc0] }
 0x62c   :  { %v2674_v14 = vpop.eup %2673 }
 0x62d   :  { %v2676_v16 = vpop.eup %2675  ;;  %v1566_v18 = vmul.f32 %v2674_v14, %v2672_v13 }
 0x62e   :  { %v1565_v21 = vmul.f32 %v2676_v16, %v1563_v15  ;;  %v2678_v24 = vpop.eup %2677  ;;  %v1797_v15 = vld [vmem:[#allocation2 + $0x20] sm:$0xc0] }
 0x630   :  { %v3251_v22 = vadd.f32 %v1566_v18, %v1565_v21 }
 0x632   :  { %2679 = vtanh.f32 %v3251_v22  ;;  %v1789_v47 = vrot.slane %v3251_v22, 6 }
 0x63c   :  { %v2680_v25 = vpop.eup %2679 }
 0x63d   :  { %v1569_v26 = vmul.f32 %v2680_v25, %v2678_v24 }
 0x63f   :  { %1570 = vst.msk [vmem:[#allocation3 + $0x8] sm:$0xc] %vm676_vm3, %v1569_v26  ;;  %v1608_v28 = vrot.slane %v1569_v26, 2  ;;  %v1800_v26 = vld [vmem:[#allocation2 + $0x38] sm:$0xc0] }
 0x641   :  { %2238 = vmatmul.mubr.msk.f32.vlgmr.msra.gmra.mrb[20].mxu0 %vm276_vm1, %v1608_v28  ;;  %2239 = vmatmul.mubr.msk.f32.vlgmr.msra.gmra.mrb[12].mxu1 %vm276_vm1, %v1608_v28 }
 0x642   :  { %2535 = vmatpush1.bf16.msra.mxu0 %v3101_v20  ;;  %2551 = vmatpush1.bf16.msra.mxu1 %v3110_v34 }
 0x643   :  { %2537 = vmatprep.subr.bf16.mxu0 %v3124_v39  ;;  %2553 = vmatprep.subr.bf16.mxu1 %v3135_v44 }
 0x644   :  { %1901 = vmatprep.mubr.f32.mxu0 %v2713_v3  ;;  %1972 = vmatprep.mubr.f32.mxu1 %v2713_v3 }
 0x646   :  { %2539 = vmatpush1.bf16.msra.mxu0 %v3137_v45  ;;  %2555 = vmatpush1.bf16.msra.mxu1 %v3149_v51  ;;  %v1571_v45 = vld [vmem:[#allocation2 + $0x20] sm:$0x30] }
 0x647   :  { %2541 = vmatprep.subr.bf16.mxu0 %v3162_v31  ;;  %2557 = vmatprep.subr.bf16.mxu1 %v3164_v57  ;;  %v1572_v57 = vld [vmem:[#allocation2 + $0x28] sm:$0x30] }
 0x64a   :  { %2543 = vmatpush1.bf16.msra.mxu0 %v3176_v1  ;;  %2559 = vmatpush1.bf16.msra.mxu1 %v3189_v56 }
 0x64b   :  { %2545 = vmatprep.subr.bf16.mxu0 %v3191_v50  ;;  %2561 = vmatprep.subr.bf16.mxu1 %v3202_v12  ;;  %v1574_v50 = vld [vmem:[#allocation2 + $0x38] sm:$0x30] }
 0x64e   :  { %2547 = vmatpush1.bf16.msra.mxu0 %v3214_v63  ;;  %2563 = vmatpush1.bf16.msra.mxu1 %v3218_v2 }
 0x64f   :  { %2569 = vmatprep.subr.bf16.mxu1 %v2568_v9 }
 0x714   :  { %v1677_v3 = vpop.f32.mrb[20].mxu0  ;;  %v1748_v20 = vpop.f32.mrb[12].mxu1 }
 0x715   :  { %v1757_v34 = vrot.slane %v1677_v3, 4  ;;  %v1679_v39 = vpop.f32.mrb[21].mxu0  ;;  %v1750_v44 = vpop.f32.mrb[13].mxu1  ;;  %v1759_v63 = vrot.slane %v1748_v20, 4  ;;  %v1799_v20 = vld [vmem:[#allocation2 + $0x30] sm:$0xc0] }
 0x716   :  { %v1758_v51 = vrot.slane %v1679_v39, 4  ;;  %v1760_v48 = vrot.slane %v1750_v44, 4 }
 0x717   :  { %v1765_v31 = vadd.f32 %v1757_v34, %v1571_v45  ;;  %v1767_v33 = vadd.f32 %v1759_v63, %v1573_v32 }
 0x718   :  { %v1766_v1 = vadd.f32 %v1758_v51, %v1572_v57  ;;  %v1768_v12 = vadd.f32 %v1760_v48, %v1574_v50 }
 0x719   :  { %v2240_v29 = vmul.f32 -1.442695, %v1765_v31 }
 0x71a   :  { %v2241_v56 = vmul.f32 -1.442695, %v1766_v1  ;;  %v2242_v2 = vmul.f32 -1.442695, %v1768_v12 }
 0x71b   :  { %2681 = vpow2.f32 %v2240_v29 }
 0x71c   :  { %2683 = vpow2.f32 %v2241_v56 }
 0x71d   :  { %2685 = vpow2.f32 %v2242_v2 }
 0x71e   :  { %2687 = vtanh.f32 %v1767_v33 }
 0x725   :  { %v2682_v35 = vpop.eup %2681 }
 0x726   :  { %v2684_v37 = vpop.eup %2683  ;;  %v1772_v38 = vadd.f32 1.0, %v2682_v35 }
 0x727   :  { %v1778_v40 = vadd.f32 1.0, %v2684_v37  ;;  %v2686_v41 = vpop.eup %2685  ;;  %v2025_v37 = vld [vmem:[#allocation3] sm:$0xff] }
 0x728   :  { %2689 = vrcp.f32 %v1772_v38  ;;  %v2688_v43 = vpop.eup %2687  ;;  %v1785_v52 = vadd.f32 1.0, %v2686_v41  ;;  %v2024_v41 = vld [vmem:[%s3328_s6 + $0x8] sm:$0xff] }
 0x729   :  { %2691 = vrcp.f32 %v1778_v40 }
 0x72a   :  { %2693 = vrcp.f32 %v1785_v52 }
 0x732   :  { %v2690_v46 = vpop.eup %2689 }
 0x733   :  { %v2692_v49 = vpop.eup %2691  ;;  %v1792_v17 = vmul.f32 %v2690_v46, %v2688_v43 }
 0x734   :  { %v1791_v53 = vmul.f32 %v2692_v49, %v1789_v47  ;;  %v2694_v36 = vpop.eup %2693 }
 0x736   :  { %v3274_v23 = vadd.f32 %v1792_v17, %v1791_v53 }
 0x738   :  { %2695 = vtanh.f32 %v3274_v23  ;;  %v2015_v56 = vrot.slane %v3274_v23, 6 }
 0x742   :  { %v2696_v58 = vpop.eup %2695 }
 0x743   :  { %v1795_v0 = vmul.f32 %v2696_v58, %v2694_v36 }
 0x745   :  { %1796 = vst.msk [vmem:[#allocation3 + $0x8] sm:$0x30] %vm903_vm4, %v1795_v0  ;;  %v1834_v42 = vrot.slane %v1795_v0, 4 }
 0x747   :  { %2243 = vmatmul.mubr.msk.f32.vlgmr.msra.gmra.mrb[22].mxu0 %vm276_vm1, %v1834_v42  ;;  %2244 = vmatmul.mubr.msk.f32.vlgmr.msra.gmra.mrb[14].mxu1 %vm276_vm1, %v1834_v42 }
 0x748   :  { %2270 = vmatprep.mubr.msk.f32.mxu0 %vm2027_vm6, %v2023_v55  ;;  %2571 = vmatpush3.bf16.msra.mxu1 %v2568_v9 }
 0x749   :  { %2573 = vmatprep.subr.bf16.mxu1 %v2572_v61 }
 0x74c   :  { %2575 = vmatpush3.bf16.msra.mxu1 %v2572_v61 }
 0x74d   :  { %2577 = vmatprep.subr.bf16.mxu1 %v2576_v30 }
 0x750   :  { %2579 = vmatpush3.bf16.msra.mxu1 %v2576_v30 }
 0x751   :  { %2581 = vmatprep.subr.bf16.mxu1 %v2580_v6 }
 0x754   :  { %2583 = vmatpush3.bf16.msra.mxu1 %v2580_v6 }
 0x81a   :  { %v1903_v7 = vpop.f32.mrb[22].mxu0  ;;  %v1974_v10 = vpop.f32.mrb[14].mxu1 }
 0x81b   :  { %v1983_v11 = vrot.slane %v1903_v7, 2  ;;  %v1905_v13 = vpop.f32.mrb[23].mxu0  ;;  %v1976_v14 = vpop.f32.mrb[15].mxu1  ;;  %v1985_v3 = vrot.slane %v1974_v10, 2 }
 0x81c   :  { %v1984_v16 = vrot.slane %v1905_v13, 2  ;;  %v1986_v25 = vrot.slane %v1976_v14, 2 }
 0x81d   :  { %v1991_v18 = vadd.f32 %v1983_v11, %v1797_v15  ;;  %v1993_v39 = vadd.f32 %v1985_v3, %v1799_v20 }
 0x81e   :  { %v1992_v21 = vadd.f32 %v1984_v16, %v1798_v19  ;;  %v1994_v28 = vadd.f32 %v1986_v25, %v1800_v26 }
 0x81f   :  { %v2245_v22 = vmul.f32 -1.442695, %v1991_v18 }
 0x820   :  { %v2246_v24 = vmul.f32 -1.442695, %v1992_v21  ;;  %v2247_v34 = vmul.f32 -1.442695, %v1994_v28 }
 0x821   :  { %2697 = vpow2.f32 %v2245_v22 }
 0x822   :  { %2699 = vpow2.f32 %v2246_v24 }
 0x823   :  { %2701 = vpow2.f32 %v2247_v34 }
 0x824   :  { %2703 = vtanh.f32 %v1993_v39 }
 0x82b   :  { %v2698_v44 = vpop.eup %2697 }
 0x82c   :  { %v2700_v45 = vpop.eup %2699  ;;  %v1998_v51 = vadd.f32 1.0, %v2698_v44 }
 0x82d   :  { %v2004_v31 = vadd.f32 1.0, %v2700_v45  ;;  %v2702_v57 = vpop.eup %2701 }
 0x82e   :  { %2705 = vrcp.f32 %v1998_v51  ;;  %v2704_v1 = vpop.eup %2703  ;;  %v2011_v12 = vadd.f32 1.0, %v2702_v57 }
 0x82f   :  { %2707 = vrcp.f32 %v2004_v31 }
 0x830   :  { %2709 = vrcp.f32 %v2011_v12 }
 0x838   :  { %v2706_v29 = vpop.eup %2705 }
 0x839   :  { %v2708_v48 = vpop.eup %2707  ;;  %v2018_v50 = vmul.f32 %v2706_v29, %v2704_v1 }
 0x83a   :  { %v2017_v63 = vmul.f32 %v2708_v48, %v2015_v56  ;;  %v2710_v2 = vpop.eup %2709 }
 0x83c   :  { %v2019_v32 = vadd.f32 %v2018_v50, %v2017_v63 }
 0x83e   :  { %2711 = vtanh.f32 %v2019_v32 }
 0x848   :  { %v2712_v33 = vpop.eup %2711 }
 0x849   :  { %v2021_v35 = vmul.f32 %v2712_v33, %v2710_v2 }
 0x84b   :  { %2022 = vst.msk [vmem:[#allocation3 + $0x8] sm:$0xc0] %vm1130_vm5, %v2021_v35 }
 0x852   :  { %v2026_v38 = vld [vmem:[#allocation3 + $0x8] sm:$0xff] }
 0x853   :  { %v2564_v40 = vpack.c.bf16 %v2026_v38, %v2025_v37 }
 0x855   :  { %2565 = vmatprep.subr.bf16.mxu0 %v2564_v40 }
 0x856   :  { %2567 = vmatpush3.bf16.msra.mxu0 %v2564_v40 }
 0x859   :  { %2271 = vmatmul.mubr.msk.f32.vlgmr.msra.gmra.mrb[24].mxu0 %vm2027_vm6, %v2024_v41 }
 0x92c   :  { %v2272_v43 = vpop.f32.mrb[24].mxu0 }
 0x92d   :  { %v2100_v46 = vpop.f32.mrb[25].mxu0 }
 0x92e   :  { %2289 = vmatprep.mubr.msk.f32.mxu1 %vm276_vm1, %v2100_v46 }
 0x92f   :  { %2290 = vmatmul.mubr.msk.f32.vlgmr.msra.gmra.mrb[16].mxu1 %vm276_vm1, %v2272_v43 }
 0xa02   :  { %v2291_v47 = vpop.f32.mrb[16].mxu1 }
 0xa03   :  { %2199 = vst [vmem:[%s3330_s8 + $0x8] sm:$0xff] %v2291_v47  ;;  %v2189_v49 = vpop.f32.mrb[17].mxu1 }
 0xa04   :  { %2198 = vst [vmem:[%s3330_s8] sm:$0xff] %v2189_v49 }

</bundles_post_ra>
